<compile_context>
chip_gen: v5e
topology: v5e:2x2
jax: 0.10.0
libtpu: 0.0.40
codegen_flags: <defaults>
</compile_context>

<pallas_src>
import functools
import numpy as np
import jax
import jax.numpy as jnp
from jax import lax
from jax.experimental import pallas as pl
from jax.experimental.pallas import tpu as pltpu

BN_EPS = 1e-5


# ----------------------------- Pallas kernel --------------------------------
def _residual_block_kernel(xw_ref, mfirst_ref, mlast_ref,
                           b1_ref, b2_ref, bs_ref,
                           g1_ref, be1_ref, g2_ref, be2_ref,
                           o_ref, *, W, Cout):
    NH = xw_ref.shape[0]

    xw = xw_ref[...]                  # (NH, (W+2)*Cin) f32, W-reflection-padded
    mfirst = mfirst_ref[...]          # (NH, 1) f32: 1.0 on rows with h == 0
    mlast = mlast_ref[...]            # (NH, 1) f32: 1.0 on rows with h == H-1

    # ---- shortcut 1x1 conv first: independent MXU work overlaps the BN phases
    sc = jnp.dot(xw.astype(jnp.bfloat16), bs_ref[...],
                 preferred_element_type=jnp.float32)           # (NH, W*Cout)

    def row_shifts(t):
        # Row r holds image row h of image n (r = n*H + h).  Build the dy=0 /
        # dy=2 operands (rows h-1 / h+1) with ReflectionPad2d(1) semantics in H:
        # a +/-1 whole-slab row shift plus a blend that re-reflects at each
        # image boundary.  (The shift could also use pltpu.roll on the XLU.)
        up = jnp.concatenate([t[:1], t[:-1]], axis=0)   # row r <- t[r-1]
        dn = jnp.concatenate([t[1:], t[-1:]], axis=0)   # row r <- t[r+1]
        t0 = up + mfirst * (dn - up)   # h==0:   reflect(-1) = 1   -> t[r+1]
        t2 = dn + mlast * (up - dn)    # h==H-1: reflect(H)  = H-2 -> t[r-1]
        return t0, t2

    def conv3x3_banded(t, band_ref):
        # t: (NH, (W+2)*C) f32, lane order (w, c).  band_ref: (3, (W+2)*C, W*Cout)
        # bf16 banded weights, one per kernel row dy.  One big-K matmul per dy
        # folds all three dx taps and the channel contraction; output is already
        # in the lane-dense (NH, W*Cout) layout.
        t0, t2 = row_shifts(t)
        acc = jnp.dot(t0.astype(jnp.bfloat16), band_ref[0],
                      preferred_element_type=jnp.float32)
        acc = acc + jnp.dot(t.astype(jnp.bfloat16), band_ref[1],
                            preferred_element_type=jnp.float32)
        acc = acc + jnp.dot(t2.astype(jnp.bfloat16), band_ref[2],
                            preferred_element_type=jnp.float32)
        return acc                                             # (NH, W*Cout) f32

    def batch_norm(a, gamma_t, beta_t):
        # Training-mode BatchNorm2d (biased variance, eps=1e-5).  Single pass
        # over `a`: per-lane sum and sum-of-squares while it is live, then fold
        # the W lane-groups that share a channel (lane index = w*Cout + c).
        s1 = jnp.sum(a, axis=0, keepdims=True)                 # (1, W*Cout)
        s2 = jnp.sum(a * a, axis=0, keepdims=True)             # (1, W*Cout)
        cs1 = s1[:, :Cout]
        cs2 = s2[:, :Cout]
        for w in range(1, W):
            cs1 = cs1 + s1[:, w * Cout:(w + 1) * Cout]
            cs2 = cs2 + s2[:, w * Cout:(w + 1) * Cout]
        inv_cnt = 1.0 / float(NH * W)
        mean = cs1 * inv_cnt                                   # (1, Cout)
        var = cs2 * inv_cnt - mean * mean                      # biased var, f32
        inv = lax.rsqrt(var + BN_EPS)
        mean_t = jnp.concatenate([mean] * W, axis=1)           # (1, W*Cout)
        inv_t = jnp.concatenate([inv] * W, axis=1)
        return (a - mean_t) * (inv_t * gamma_t) + beta_t

    # ---- main branch: conv3x3 -> BN -> ReLU -> conv3x3 -> BN (all lane-dense)
    h = conv3x3_banded(xw, b1_ref)
    h = batch_norm(h, g1_ref[...], be1_ref[...])
    h = jnp.maximum(h, 0.0)

    # W-direction reflection pad of the intermediate: pure lane concat, no
    # (H+2, W+2) scratch buffer.
    hp = jnp.concatenate(
        [h[:, Cout:2 * Cout], h, h[:, (W - 2) * Cout:(W - 1) * Cout]], axis=1)

    h = conv3x3_banded(hp, b2_ref)
    h = batch_norm(h, g2_ref[...], be2_ref[...])

    o_ref[...] = (sc + h).astype(o_ref.dtype)   # 128-lane dense, unmasked store


# ------------------------------- wrapper -------------------------------------
def residual_block_forward(x_nchw, kernel_params):
    """x_nchw: (N, Cin, H, W) float32 -> (N, Cout, H, W) float32."""
    b1, b2, bs, g1t, be1t, g2t, be2t = kernel_params
    N, Cin, H, W = x_nchw.shape
    Cout = g1t.shape[-1] // W

    # Layout plumbing stays in the wrapper (review): NCHW -> lane-dense
    # (N*H, (W+2)*Cin), W-direction reflection pad already applied.
    x_nhwc = jnp.transpose(x_nchw, (0, 2, 3, 1))
    x_wpad = jnp.pad(x_nhwc, ((0, 0), (0, 0), (1, 1), (0, 0)), mode='reflect')
    xw = x_wpad.reshape(N * H, (W + 2) * Cin).astype(jnp.float32)

    # Per-row image-boundary masks (h == 0 / h == H-1) for the in-kernel
    # H-direction reflection.
    h_idx = jnp.tile(jnp.arange(H, dtype=jnp.int32), N)
    mfirst = (h_idx == 0).astype(jnp.float32).reshape(N * H, 1)
    mlast = (h_idx == H - 1).astype(jnp.float32).reshape(N * H, 1)

    vmem = pl.BlockSpec(memory_space=pltpu.MemorySpace.VMEM)
    out2d = pl.pallas_call(
        functools.partial(_residual_block_kernel, W=W, Cout=Cout),
        out_shape=jax.ShapeDtypeStruct((N * H, W * Cout), jnp.float32),
        in_specs=[vmem] * 10,
        out_specs=vmem,
        compiler_params=pltpu.CompilerParams(
            vmem_limit_bytes=32 * 1024 * 1024),
    )(xw, mfirst, mlast, b1, b2, bs, g1t, be1t, g2t, be2t)

    out_nhwc = out2d.reshape(N, H, W, Cout)
    return jnp.transpose(out_nhwc, (0, 3, 1, 2))


# -------------------- parameter setup (plain-JAX/numpy glue) -----------------
def spectral_normalize(w_oihw, key, n_power_iterations=1, eps=1e-12):
    """Mimic torch.nn.utils.spectral_norm reparametrization (one power iteration)."""
    co = w_oihw.shape[0]
    w_mat = w_oihw.reshape(co, -1)
    u = jax.random.normal(key, (co,), dtype=w_oihw.dtype)
    u = u / (jnp.linalg.norm(u) + eps)
    v = w_mat.T @ u
    for _ in range(n_power_iterations):
        v = w_mat.T @ u
        v = v / (jnp.linalg.norm(v) + eps)
        u = w_mat @ v
        u = u / (jnp.linalg.norm(u) + eps)
    sigma = u @ (w_mat @ v)
    return w_oihw / sigma


def _conv3x3_to_bands(w_oihw, W):
    """(Cout, Cin, 3, 3) conv weight -> (3, (W+2)*Cin, W*Cout) bf16 banded
    matrices (one per kernel row dy); the dx taps live on the K axis so each
    conv row is one big-K MXU matmul with a lane-dense output."""
    w = np.asarray(w_oihw, np.float32)
    Cout, Cin = w.shape[0], w.shape[1]
    bands = np.zeros((3, (W + 2) * Cin, W * Cout), np.float32)
    for dy in range(3):
        for wo in range(W):
            for dx in range(3):
                wp = wo + dx            # position in the W-padded input row
                bands[dy, wp * Cin:(wp + 1) * Cin,
                      wo * Cout:(wo + 1) * Cout] = w[:, :, dy, dx].T
    return jnp.asarray(bands, jnp.bfloat16)


def _conv1x1_to_band(ws_oihw, W):
    """(Cout, Cin, 1, 1) shortcut weight -> ((W+2)*Cin, W*Cout) bf16 block
    matrix aligned with the W-padded input (offset by one w position)."""
    w = np.asarray(ws_oihw, np.float32)[:, :, 0, 0]
    Cout, Cin = w.shape
    band = np.zeros(((W + 2) * Cin, W * Cout), np.float32)
    for wo in range(W):
        band[(wo + 1) * Cin:(wo + 2) * Cin, wo * Cout:(wo + 1) * Cout] = w.T
    return jnp.asarray(band, jnp.bfloat16)


def init_params(key, dim_in, dim_out, W):
    k1, k2, k3, ku1, ku2, kg1, kb1, kg2, kb2 = jax.random.split(key, 9)
    w1 = jax.random.normal(k1, (dim_out, dim_in, 3, 3), jnp.float32) / np.sqrt(dim_in * 9)
    w2 = jax.random.normal(k2, (dim_out, dim_out, 3, 3), jnp.float32) / np.sqrt(dim_out * 9)
    ws = jax.random.normal(k3, (dim_out, dim_in, 1, 1), jnp.float32) / np.sqrt(dim_in)
    w1 = spectral_normalize(w1, ku1)
    w2 = spectral_normalize(w2, ku2)
    g1 = 1.0 + 0.1 * jax.random.normal(kg1, (dim_out,), jnp.float32)
    b1 = 0.1 * jax.random.normal(kb1, (dim_out,), jnp.float32)
    g2 = 1.0 + 0.1 * jax.random.normal(kg2, (dim_out,), jnp.float32)
    b2 = 0.1 * jax.random.normal(kb2, (dim_out,), jnp.float32)

    def tile_wc(v):  # (Cout,) -> (1, W*Cout), lane index = w*Cout + c
        return jnp.asarray(np.tile(np.asarray(v, np.float32), W).reshape(1, -1))

    kernel_params = (_conv3x3_to_bands(w1, W), _conv3x3_to_bands(w2, W),
                     _conv1x1_to_band(ws, W),
                     tile_wc(g1), tile_wc(b1), tile_wc(g2), tile_wc(b2))
    torch_layout_params = (w1, w2, ws, g1, b1, g2, b2)
    return kernel_params, torch_layout_params


# ---------------- pure-JAX reference (correctness check) ---------------------
def ref_forward(x, w1, w2, ws, g1, b1, g2, b2):
    def conv3x3_reflect(h, w):
        hp = jnp.pad(h, ((0, 0), (0, 0), (1, 1), (1, 1)), mode='reflect')
        return lax.conv_general_dilated(hp, w, (1, 1), 'VALID',
                                        dimension_numbers=('NCHW', 'OIHW', 'NCHW'))

    def bn(h, g, b):
        mean = h.mean(axis=(0, 2, 3), keepdims=True)
        var = ((h - mean) ** 2).mean(axis=(0, 2, 3), keepdims=True)
        return ((h - mean) / jnp.sqrt(var + BN_EPS)) * g.reshape(1, -1, 1, 1) \
            + b.reshape(1, -1, 1, 1)

    h = conv3x3_reflect(x, w1)
    h = bn(h, g1, b1)
    h = jnp.maximum(h, 0.0)
    h = conv3x3_reflect(h, w2)
    h = bn(h, g2, b2)
    sc = lax.conv_general_dilated(x, ws, (1, 1), 'VALID',
                                  dimension_numbers=('NCHW', 'OIHW', 'NCHW'))
    return sc + h


if __name__ == "__main__":
    key = jax.random.PRNGKey(0)
    kx, kp = jax.random.split(key)
    N, Cin, Cout, H, W = 2, 4, 8, 16, 16   # dim_in != dim_out -> learned shortcut

    x = jax.random.normal(kx, (N, Cin, H, W), jnp.float32)
    kernel_params, torch_params = init_params(kp, Cin, Cout, W)

    out = residual_block_forward(x, kernel_params)
    out = jax.block_until_ready(out)

    ref = ref_forward(x, *torch_params)
    assert out.shape == (N, Cout, H, W)
    # bf16 MXU operands -> slightly looser tolerance than a pure-f32 pipeline.
    np.testing.assert_allclose(np.asarray(out), np.asarray(ref), rtol=5e-2, atol=5e-2)

    print("KERNEL_OK")
</pallas_src>

<mosaic_0001>
module attributes {stable_mosaic.version = 11 : i64} {
  func.func @_residual_block_kernel(%arg0: memref<32x72xf32, #tpu.memory_space<vmem>>, %arg1: memref<32x1xf32, #tpu.memory_space<vmem>>, %arg2: memref<32x1xf32, #tpu.memory_space<vmem>>, %arg3: memref<3x72x128xbf16, #tpu.memory_space<vmem>>, %arg4: memref<3x144x128xbf16, #tpu.memory_space<vmem>>, %arg5: memref<72x128xbf16, #tpu.memory_space<vmem>>, %arg6: memref<1x128xf32, #tpu.memory_space<vmem>>, %arg7: memref<1x128xf32, #tpu.memory_space<vmem>>, %arg8: memref<1x128xf32, #tpu.memory_space<vmem>>, %arg9: memref<1x128xf32, #tpu.memory_space<vmem>>, %arg10: memref<32x128xf32, #tpu.memory_space<vmem>>) attributes {dimension_semantics = [], scalar_prefetch = 0 : i64, scratch_operands = 0 : i64, tpu.core_type = #tpu.core_type<tc>} {
    %c0 = arith.constant 0 : index
    %c0_0 = arith.constant 0 : index
    %0 = vector.load %arg0[%c0, %c0_0] : memref<32x72xf32, #tpu.memory_space<vmem>>, vector<32x72xf32>
    %c0_1 = arith.constant 0 : index
    %c0_2 = arith.constant 0 : index
    %1 = vector.load %arg1[%c0_1, %c0_2] : memref<32x1xf32, #tpu.memory_space<vmem>>, vector<32x1xf32>
    %c0_3 = arith.constant 0 : index
    %c0_4 = arith.constant 0 : index
    %2 = vector.load %arg2[%c0_3, %c0_4] : memref<32x1xf32, #tpu.memory_space<vmem>>, vector<32x1xf32>
    %3 = arith.truncf %0 : vector<32x72xf32> to vector<32x72xbf16>
    %c0_5 = arith.constant 0 : index
    %c0_6 = arith.constant 0 : index
    %4 = vector.load %arg5[%c0_5, %c0_6] : memref<72x128xbf16, #tpu.memory_space<vmem>>, vector<72x128xbf16>
    %cst = arith.constant dense<0.000000e+00> : vector<32x128xf32>
    %5 = tpu.matmul %3, %4, %cst {dimension_numbers = #tpu.dot_dimension_numbers<[1], [0], [0], [1], [0, 0, 1, 1], [], []>} : vector<32x72xbf16>, vector<72x128xbf16>, vector<32x128xf32> -> vector<32x128xf32>
    %6 = vector.extract_strided_slice %0 {offsets = [0, 0], sizes = [1, 72], strides = [1, 1]} : vector<32x72xf32> to vector<1x72xf32>
    %7 = vector.extract_strided_slice %0 {offsets = [0, 0], sizes = [31, 72], strides = [1, 1]} : vector<32x72xf32> to vector<31x72xf32>
    %8 = tpu.concatenate %6, %7 in 0 : vector<1x72xf32>, vector<31x72xf32> -> vector<32x72xf32>
    %9 = vector.extract_strided_slice %0 {offsets = [1, 0], sizes = [31, 72], strides = [1, 1]} : vector<32x72xf32> to vector<31x72xf32>
    %10 = vector.extract_strided_slice %0 {offsets = [31, 0], sizes = [1, 72], strides = [1, 1]} : vector<32x72xf32> to vector<1x72xf32>
    %11 = tpu.concatenate %9, %10 in 0 : vector<31x72xf32>, vector<1x72xf32> -> vector<32x72xf32>
    %12 = arith.subf %11, %8 : vector<32x72xf32>
    %13 = vector.broadcast %1 : vector<32x1xf32> to vector<32x72xf32>
    %14 = arith.mulf %13, %12 : vector<32x72xf32>
    %15 = arith.addf %8, %14 : vector<32x72xf32>
    %16 = arith.subf %8, %11 : vector<32x72xf32>
    %17 = vector.broadcast %2 : vector<32x1xf32> to vector<32x72xf32>
    %18 = arith.mulf %17, %16 : vector<32x72xf32>
    %19 = arith.addf %11, %18 : vector<32x72xf32>
    %20 = arith.truncf %15 : vector<32x72xf32> to vector<32x72xbf16>
    %c0_7 = arith.constant 0 : index
    %c0_8 = arith.constant 0 : index
    %c0_9 = arith.constant 0 : index
    %21 = vector.load %arg3[%c0_7, %c0_8, %c0_9] : memref<3x72x128xbf16, #tpu.memory_space<vmem>>, vector<1x72x128xbf16>
    %22 = vector.shape_cast %21 : vector<1x72x128xbf16> to vector<72x128xbf16>
    %cst_10 = arith.constant dense<0.000000e+00> : vector<32x128xf32>
    %23 = tpu.matmul %20, %22, %cst_10 {dimension_numbers = #tpu.dot_dimension_numbers<[1], [0], [0], [1], [0, 0, 1, 1], [], []>} : vector<32x72xbf16>, vector<72x128xbf16>, vector<32x128xf32> -> vector<32x128xf32>
    %24 = arith.truncf %0 : vector<32x72xf32> to vector<32x72xbf16>
    %c1 = arith.constant 1 : index
    %c0_11 = arith.constant 0 : index
    %c0_12 = arith.constant 0 : index
    %25 = vector.load %arg3[%c1, %c0_11, %c0_12] : memref<3x72x128xbf16, #tpu.memory_space<vmem>>, vector<1x72x128xbf16>
    %26 = vector.shape_cast %25 : vector<1x72x128xbf16> to vector<72x128xbf16>
    %cst_13 = arith.constant dense<0.000000e+00> : vector<32x128xf32>
    %27 = tpu.matmul %24, %26, %cst_13 {dimension_numbers = #tpu.dot_dimension_numbers<[1], [0], [0], [1], [0, 0, 1, 1], [], []>} : vector<32x72xbf16>, vector<72x128xbf16>, vector<32x128xf32> -> vector<32x128xf32>
    %28 = arith.addf %23, %27 : vector<32x128xf32>
    %29 = arith.truncf %19 : vector<32x72xf32> to vector<32x72xbf16>
    %c2 = arith.constant 2 : index
    %c0_14 = arith.constant 0 : index
    %c0_15 = arith.constant 0 : index
    %30 = vector.load %arg3[%c2, %c0_14, %c0_15] : memref<3x72x128xbf16, #tpu.memory_space<vmem>>, vector<1x72x128xbf16>
    %31 = vector.shape_cast %30 : vector<1x72x128xbf16> to vector<72x128xbf16>
    %cst_16 = arith.constant dense<0.000000e+00> : vector<32x128xf32>
    %32 = tpu.matmul %29, %31, %cst_16 {dimension_numbers = #tpu.dot_dimension_numbers<[1], [0], [0], [1], [0, 0, 1, 1], [], []>} : vector<32x72xbf16>, vector<72x128xbf16>, vector<32x128xf32> -> vector<32x128xf32>
    %33 = arith.addf %28, %32 : vector<32x128xf32>
    %c0_17 = arith.constant 0 : index
    %c0_18 = arith.constant 0 : index
    %34 = vector.load %arg6[%c0_17, %c0_18] : memref<1x128xf32, #tpu.memory_space<vmem>>, vector<1x128xf32>
    %c0_19 = arith.constant 0 : index
    %c0_20 = arith.constant 0 : index
    %35 = vector.load %arg7[%c0_19, %c0_20] : memref<1x128xf32, #tpu.memory_space<vmem>>, vector<1x128xf32>
    %cst_21 = arith.constant dense<0.000000e+00> : vector<128xf32>
    %36 = vector.multi_reduction <add>, %33, %cst_21 [0] : vector<32x128xf32> to vector<128xf32>
    %37 = vector.shape_cast %36 : vector<128xf32> to vector<1x128xf32>
    %38 = arith.mulf %33, %33 : vector<32x128xf32>
    %cst_22 = arith.constant dense<0.000000e+00> : vector<128xf32>
    %39 = vector.multi_reduction <add>, %38, %cst_22 [0] : vector<32x128xf32> to vector<128xf32>
    %40 = vector.shape_cast %39 : vector<128xf32> to vector<1x128xf32>
    %41 = vector.extract_strided_slice %37 {offsets = [0, 0], sizes = [1, 8], strides = [1, 1]} : vector<1x128xf32> to vector<1x8xf32>
    %42 = vector.extract_strided_slice %40 {offsets = [0, 0], sizes = [1, 8], strides = [1, 1]} : vector<1x128xf32> to vector<1x8xf32>
    %43 = vector.extract_strided_slice %37 {offsets = [0, 8], sizes = [1, 8], strides = [1, 1]} : vector<1x128xf32> to vector<1x8xf32>
    %44 = arith.addf %41, %43 : vector<1x8xf32>
    %45 = vector.extract_strided_slice %40 {offsets = [0, 8], sizes = [1, 8], strides = [1, 1]} : vector<1x128xf32> to vector<1x8xf32>
    %46 = arith.addf %42, %45 : vector<1x8xf32>
    %47 = vector.extract_strided_slice %37 {offsets = [0, 16], sizes = [1, 8], strides = [1, 1]} : vector<1x128xf32> to vector<1x8xf32>
    %48 = arith.addf %44, %47 : vector<1x8xf32>
    %49 = vector.extract_strided_slice %40 {offsets = [0, 16], sizes = [1, 8], strides = [1, 1]} : vector<1x128xf32> to vector<1x8xf32>
    %50 = arith.addf %46, %49 : vector<1x8xf32>
    %51 = vector.extract_strided_slice %37 {offsets = [0, 24], sizes = [1, 8], strides = [1, 1]} : vector<1x128xf32> to vector<1x8xf32>
    %52 = arith.addf %48, %51 : vector<1x8xf32>
    %53 = vector.extract_strided_slice %40 {offsets = [0, 24], sizes = [1, 8], strides = [1, 1]} : vector<1x128xf32> to vector<1x8xf32>
    %54 = arith.addf %50, %53 : vector<1x8xf32>
    %55 = vector.extract_strided_slice %37 {offsets = [0, 32], sizes = [1, 8], strides = [1, 1]} : vector<1x128xf32> to vector<1x8xf32>
    %56 = arith.addf %52, %55 : vector<1x8xf32>
    %57 = vector.extract_strided_slice %40 {offsets = [0, 32], sizes = [1, 8], strides = [1, 1]} : vector<1x128xf32> to vector<1x8xf32>
    %58 = arith.addf %54, %57 : vector<1x8xf32>
    %59 = vector.extract_strided_slice %37 {offsets = [0, 40], sizes = [1, 8], strides = [1, 1]} : vector<1x128xf32> to vector<1x8xf32>
    %60 = arith.addf %56, %59 : vector<1x8xf32>
    %61 = vector.extract_strided_slice %40 {offsets = [0, 40], sizes = [1, 8], strides = [1, 1]} : vector<1x128xf32> to vector<1x8xf32>
    %62 = arith.addf %58, %61 : vector<1x8xf32>
    %63 = vector.extract_strided_slice %37 {offsets = [0, 48], sizes = [1, 8], strides = [1, 1]} : vector<1x128xf32> to vector<1x8xf32>
    %64 = arith.addf %60, %63 : vector<1x8xf32>
    %65 = vector.extract_strided_slice %40 {offsets = [0, 48], sizes = [1, 8], strides = [1, 1]} : vector<1x128xf32> to vector<1x8xf32>
    %66 = arith.addf %62, %65 : vector<1x8xf32>
    %67 = vector.extract_strided_slice %37 {offsets = [0, 56], sizes = [1, 8], strides = [1, 1]} : vector<1x128xf32> to vector<1x8xf32>
    %68 = arith.addf %64, %67 : vector<1x8xf32>
    %69 = vector.extract_strided_slice %40 {offsets = [0, 56], sizes = [1, 8], strides = [1, 1]} : vector<1x128xf32> to vector<1x8xf32>
    %70 = arith.addf %66, %69 : vector<1x8xf32>
    %71 = vector.extract_strided_slice %37 {offsets = [0, 64], sizes = [1, 8], strides = [1, 1]} : vector<1x128xf32> to vector<1x8xf32>
    %72 = arith.addf %68, %71 : vector<1x8xf32>
    %73 = vector.extract_strided_slice %40 {offsets = [0, 64], sizes = [1, 8], strides = [1, 1]} : vector<1x128xf32> to vector<1x8xf32>
    %74 = arith.addf %70, %73 : vector<1x8xf32>
    %75 = vector.extract_strided_slice %37 {offsets = [0, 72], sizes = [1, 8], strides = [1, 1]} : vector<1x128xf32> to vector<1x8xf32>
    %76 = arith.addf %72, %75 : vector<1x8xf32>
    %77 = vector.extract_strided_slice %40 {offsets = [0, 72], sizes = [1, 8], strides = [1, 1]} : vector<1x128xf32> to vector<1x8xf32>
    %78 = arith.addf %74, %77 : vector<1x8xf32>
    %79 = vector.extract_strided_slice %37 {offsets = [0, 80], sizes = [1, 8], strides = [1, 1]} : vector<1x128xf32> to vector<1x8xf32>
    %80 = arith.addf %76, %79 : vector<1x8xf32>
    %81 = vector.extract_strided_slice %40 {offsets = [0, 80], sizes = [1, 8], strides = [1, 1]} : vector<1x128xf32> to vector<1x8xf32>
    %82 = arith.addf %78, %81 : vector<1x8xf32>
    %83 = vector.extract_strided_slice %37 {offsets = [0, 88], sizes = [1, 8], strides = [1, 1]} : vector<1x128xf32> to vector<1x8xf32>
    %84 = arith.addf %80, %83 : vector<1x8xf32>
    %85 = vector.extract_strided_slice %40 {offsets = [0, 88], sizes = [1, 8], strides = [1, 1]} : vector<1x128xf32> to vector<1x8xf32>
    %86 = arith.addf %82, %85 : vector<1x8xf32>
    %87 = vector.extract_strided_slice %37 {offsets = [0, 96], sizes = [1, 8], strides = [1, 1]} : vector<1x128xf32> to vector<1x8xf32>
    %88 = arith.addf %84, %87 : vector<1x8xf32>
    %89 = vector.extract_strided_slice %40 {offsets = [0, 96], sizes = [1, 8], strides = [1, 1]} : vector<1x128xf32> to vector<1x8xf32>
    %90 = arith.addf %86, %89 : vector<1x8xf32>
    %91 = vector.extract_strided_slice %37 {offsets = [0, 104], sizes = [1, 8], strides = [1, 1]} : vector<1x128xf32> to vector<1x8xf32>
    %92 = arith.addf %88, %91 : vector<1x8xf32>
    %93 = vector.extract_strided_slice %40 {offsets = [0, 104], sizes = [1, 8], strides = [1, 1]} : vector<1x128xf32> to vector<1x8xf32>
    %94 = arith.addf %90, %93 : vector<1x8xf32>
    %95 = vector.extract_strided_slice %37 {offsets = [0, 112], sizes = [1, 8], strides = [1, 1]} : vector<1x128xf32> to vector<1x8xf32>
    %96 = arith.addf %92, %95 : vector<1x8xf32>
    %97 = vector.extract_strided_slice %40 {offsets = [0, 112], sizes = [1, 8], strides = [1, 1]} : vector<1x128xf32> to vector<1x8xf32>
    %98 = arith.addf %94, %97 : vector<1x8xf32>
    %99 = vector.extract_strided_slice %37 {offsets = [0, 120], sizes = [1, 8], strides = [1, 1]} : vector<1x128xf32> to vector<1x8xf32>
    %100 = arith.addf %96, %99 : vector<1x8xf32>
    %101 = vector.extract_strided_slice %40 {offsets = [0, 120], sizes = [1, 8], strides = [1, 1]} : vector<1x128xf32> to vector<1x8xf32>
    %102 = arith.addf %98, %101 : vector<1x8xf32>
    %cst_23 = arith.constant 0.001953125 : f32
    %103 = vector.broadcast %cst_23 : f32 to vector<1x8xf32>
    %104 = arith.mulf %100, %103 : vector<1x8xf32>
    %cst_24 = arith.constant 0.001953125 : f32
    %105 = vector.broadcast %cst_24 : f32 to vector<1x8xf32>
    %106 = arith.mulf %102, %105 : vector<1x8xf32>
    %107 = arith.mulf %104, %104 : vector<1x8xf32>
    %108 = arith.subf %106, %107 : vector<1x8xf32>
    %cst_25 = arith.constant 9.99999974E-6 : f32
    %109 = vector.broadcast %cst_25 : f32 to vector<1x8xf32>
    %110 = arith.addf %108, %109 : vector<1x8xf32>
    %111 = math.rsqrt %110 : vector<1x8xf32>
    %112 = tpu.concatenate %104, %104, %104, %104, %104, %104, %104, %104, %104, %104, %104, %104, %104, %104, %104, %104 in 1 : vector<1x8xf32>, vector<1x8xf32>, vector<1x8xf32>, vector<1x8xf32>, vector<1x8xf32>, vector<1x8xf32>, vector<1x8xf32>, vector<1x8xf32>, vector<1x8xf32>, vector<1x8xf32>, vector<1x8xf32>, vector<1x8xf32>, vector<1x8xf32>, vector<1x8xf32>, vector<1x8xf32>, vector<1x8xf32> -> vector<1x128xf32>
    %113 = tpu.concatenate %111, %111, %111, %111, %111, %111, %111, %111, %111, %111, %111, %111, %111, %111, %111, %111 in 1 : vector<1x8xf32>, vector<1x8xf32>, vector<1x8xf32>, vector<1x8xf32>, vector<1x8xf32>, vector<1x8xf32>, vector<1x8xf32>, vector<1x8xf32>, vector<1x8xf32>, vector<1x8xf32>, vector<1x8xf32>, vector<1x8xf32>, vector<1x8xf32>, vector<1x8xf32>, vector<1x8xf32>, vector<1x8xf32> -> vector<1x128xf32>
    %114 = vector.broadcast %112 : vector<1x128xf32> to vector<32x128xf32>
    %115 = arith.subf %33, %114 : vector<32x128xf32>
    %116 = arith.mulf %113, %34 : vector<1x128xf32>
    %117 = vector.broadcast %116 : vector<1x128xf32> to vector<32x128xf32>
    %118 = arith.mulf %115, %117 : vector<32x128xf32>
    %119 = vector.broadcast %35 : vector<1x128xf32> to vector<32x128xf32>
    %120 = arith.addf %118, %119 : vector<32x128xf32>
    %cst_26 = arith.constant 0.000000e+00 : f32
    %121 = vector.broadcast %cst_26 : f32 to vector<32x128xf32>
    %122 = arith.maximumf %120, %121 : vector<32x128xf32>
    %123 = vector.extract_strided_slice %122 {offsets = [0, 8], sizes = [32, 8], strides = [1, 1]} : vector<32x128xf32> to vector<32x8xf32>
    %124 = vector.extract_strided_slice %122 {offsets = [0, 112], sizes = [32, 8], strides = [1, 1]} : vector<32x128xf32> to vector<32x8xf32>
    %125 = tpu.concatenate %123, %122, %124 in 1 : vector<32x8xf32>, vector<32x128xf32>, vector<32x8xf32> -> vector<32x144xf32>
    %126 = vector.extract_strided_slice %125 {offsets = [0, 0], sizes = [1, 144], strides = [1, 1]} : vector<32x144xf32> to vector<1x144xf32>
    %127 = vector.extract_strided_slice %125 {offsets = [0, 0], sizes = [31, 144], strides = [1, 1]} : vector<32x144xf32> to vector<31x144xf32>
    %128 = tpu.concatenate %126, %127 in 0 : vector<1x144xf32>, vector<31x144xf32> -> vector<32x144xf32>
    %129 = vector.extract_strided_slice %125 {offsets = [1, 0], sizes = [31, 144], strides = [1, 1]} : vector<32x144xf32> to vector<31x144xf32>
    %130 = vector.extract_strided_slice %125 {offsets = [31, 0], sizes = [1, 144], strides = [1, 1]} : vector<32x144xf32> to vector<1x144xf32>
    %131 = tpu.concatenate %129, %130 in 0 : vector<31x144xf32>, vector<1x144xf32> -> vector<32x144xf32>
    %132 = arith.subf %131, %128 : vector<32x144xf32>
    %133 = vector.broadcast %1 : vector<32x1xf32> to vector<32x144xf32>
    %134 = arith.mulf %133, %132 : vector<32x144xf32>
    %135 = arith.addf %128, %134 : vector<32x144xf32>
    %136 = arith.subf %128, %131 : vector<32x144xf32>
    %137 = vector.broadcast %2 : vector<32x1xf32> to vector<32x144xf32>
    %138 = arith.mulf %137, %136 : vector<32x144xf32>
    %139 = arith.addf %131, %138 : vector<32x144xf32>
    %140 = arith.truncf %135 : vector<32x144xf32> to vector<32x144xbf16>
    %c0_27 = arith.constant 0 : index
    %c0_28 = arith.constant 0 : index
    %c0_29 = arith.constant 0 : index
    %141 = vector.load %arg4[%c0_27, %c0_28, %c0_29] : memref<3x144x128xbf16, #tpu.memory_space<vmem>>, vector<1x144x128xbf16>
    %142 = vector.shape_cast %141 : vector<1x144x128xbf16> to vector<144x128xbf16>
    %cst_30 = arith.constant dense<0.000000e+00> : vector<32x128xf32>
    %143 = tpu.matmul %140, %142, %cst_30 {dimension_numbers = #tpu.dot_dimension_numbers<[1], [0], [0], [1], [0, 0, 1, 1], [], []>} : vector<32x144xbf16>, vector<144x128xbf16>, vector<32x128xf32> -> vector<32x128xf32>
    %144 = arith.truncf %125 : vector<32x144xf32> to vector<32x144xbf16>
    %c1_31 = arith.constant 1 : index
    %c0_32 = arith.constant 0 : index
    %c0_33 = arith.constant 0 : index
    %145 = vector.load %arg4[%c1_31, %c0_32, %c0_33] : memref<3x144x128xbf16, #tpu.memory_space<vmem>>, vector<1x144x128xbf16>
    %146 = vector.shape_cast %145 : vector<1x144x128xbf16> to vector<144x128xbf16>
    %cst_34 = arith.constant dense<0.000000e+00> : vector<32x128xf32>
    %147 = tpu.matmul %144, %146, %cst_34 {dimension_numbers = #tpu.dot_dimension_numbers<[1], [0], [0], [1], [0, 0, 1, 1], [], []>} : vector<32x144xbf16>, vector<144x128xbf16>, vector<32x128xf32> -> vector<32x128xf32>
    %148 = arith.addf %143, %147 : vector<32x128xf32>
    %149 = arith.truncf %139 : vector<32x144xf32> to vector<32x144xbf16>
    %c2_35 = arith.constant 2 : index
    %c0_36 = arith.constant 0 : index
    %c0_37 = arith.constant 0 : index
    %150 = vector.load %arg4[%c2_35, %c0_36, %c0_37] : memref<3x144x128xbf16, #tpu.memory_space<vmem>>, vector<1x144x128xbf16>
    %151 = vector.shape_cast %150 : vector<1x144x128xbf16> to vector<144x128xbf16>
    %cst_38 = arith.constant dense<0.000000e+00> : vector<32x128xf32>
    %152 = tpu.matmul %149, %151, %cst_38 {dimension_numbers = #tpu.dot_dimension_numbers<[1], [0], [0], [1], [0, 0, 1, 1], [], []>} : vector<32x144xbf16>, vector<144x128xbf16>, vector<32x128xf32> -> vector<32x128xf32>
    %153 = arith.addf %148, %152 : vector<32x128xf32>
    %c0_39 = arith.constant 0 : index
    %c0_40 = arith.constant 0 : index
    %154 = vector.load %arg8[%c0_39, %c0_40] : memref<1x128xf32, #tpu.memory_space<vmem>>, vector<1x128xf32>
    %c0_41 = arith.constant 0 : index
    %c0_42 = arith.constant 0 : index
    %155 = vector.load %arg9[%c0_41, %c0_42] : memref<1x128xf32, #tpu.memory_space<vmem>>, vector<1x128xf32>
    %cst_43 = arith.constant dense<0.000000e+00> : vector<128xf32>
    %156 = vector.multi_reduction <add>, %153, %cst_43 [0] : vector<32x128xf32> to vector<128xf32>
    %157 = vector.shape_cast %156 : vector<128xf32> to vector<1x128xf32>
    %158 = arith.mulf %153, %153 : vector<32x128xf32>
    %cst_44 = arith.constant dense<0.000000e+00> : vector<128xf32>
    %159 = vector.multi_reduction <add>, %158, %cst_44 [0] : vector<32x128xf32> to vector<128xf32>
    %160 = vector.shape_cast %159 : vector<128xf32> to vector<1x128xf32>
    %161 = vector.extract_strided_slice %157 {offsets = [0, 0], sizes = [1, 8], strides = [1, 1]} : vector<1x128xf32> to vector<1x8xf32>
    %162 = vector.extract_strided_slice %160 {offsets = [0, 0], sizes = [1, 8], strides = [1, 1]} : vector<1x128xf32> to vector<1x8xf32>
    %163 = vector.extract_strided_slice %157 {offsets = [0, 8], sizes = [1, 8], strides = [1, 1]} : vector<1x128xf32> to vector<1x8xf32>
    %164 = arith.addf %161, %163 : vector<1x8xf32>
    %165 = vector.extract_strided_slice %160 {offsets = [0, 8], sizes = [1, 8], strides = [1, 1]} : vector<1x128xf32> to vector<1x8xf32>
    %166 = arith.addf %162, %165 : vector<1x8xf32>
    %167 = vector.extract_strided_slice %157 {offsets = [0, 16], sizes = [1, 8], strides = [1, 1]} : vector<1x128xf32> to vector<1x8xf32>
    %168 = arith.addf %164, %167 : vector<1x8xf32>
    %169 = vector.extract_strided_slice %160 {offsets = [0, 16], sizes = [1, 8], strides = [1, 1]} : vector<1x128xf32> to vector<1x8xf32>
    %170 = arith.addf %166, %169 : vector<1x8xf32>
    %171 = vector.extract_strided_slice %157 {offsets = [0, 24], sizes = [1, 8], strides = [1, 1]} : vector<1x128xf32> to vector<1x8xf32>
    %172 = arith.addf %168, %171 : vector<1x8xf32>
    %173 = vector.extract_strided_slice %160 {offsets = [0, 24], sizes = [1, 8], strides = [1, 1]} : vector<1x128xf32> to vector<1x8xf32>
    %174 = arith.addf %170, %173 : vector<1x8xf32>
    %175 = vector.extract_strided_slice %157 {offsets = [0, 32], sizes = [1, 8], strides = [1, 1]} : vector<1x128xf32> to vector<1x8xf32>
    %176 = arith.addf %172, %175 : vector<1x8xf32>
    %177 = vector.extract_strided_slice %160 {offsets = [0, 32], sizes = [1, 8], strides = [1, 1]} : vector<1x128xf32> to vector<1x8xf32>
    %178 = arith.addf %174, %177 : vector<1x8xf32>
    %179 = vector.extract_strided_slice %157 {offsets = [0, 40], sizes = [1, 8], strides = [1, 1]} : vector<1x128xf32> to vector<1x8xf32>
    %180 = arith.addf %176, %179 : vector<1x8xf32>
    %181 = vector.extract_strided_slice %160 {offsets = [0, 40], sizes = [1, 8], strides = [1, 1]} : vector<1x128xf32> to vector<1x8xf32>
    %182 = arith.addf %178, %181 : vector<1x8xf32>
    %183 = vector.extract_strided_slice %157 {offsets = [0, 48], sizes = [1, 8], strides = [1, 1]} : vector<1x128xf32> to vector<1x8xf32>
    %184 = arith.addf %180, %183 : vector<1x8xf32>
    %185 = vector.extract_strided_slice %160 {offsets = [0, 48], sizes = [1, 8], strides = [1, 1]} : vector<1x128xf32> to vector<1x8xf32>
    %186 = arith.addf %182, %185 : vector<1x8xf32>
    %187 = vector.extract_strided_slice %157 {offsets = [0, 56], sizes = [1, 8], strides = [1, 1]} : vector<1x128xf32> to vector<1x8xf32>
    %188 = arith.addf %184, %187 : vector<1x8xf32>
    %189 = vector.extract_strided_slice %160 {offsets = [0, 56], sizes = [1, 8], strides = [1, 1]} : vector<1x128xf32> to vector<1x8xf32>
    %190 = arith.addf %186, %189 : vector<1x8xf32>
    %191 = vector.extract_strided_slice %157 {offsets = [0, 64], sizes = [1, 8], strides = [1, 1]} : vector<1x128xf32> to vector<1x8xf32>
    %192 = arith.addf %188, %191 : vector<1x8xf32>
    %193 = vector.extract_strided_slice %160 {offsets = [0, 64], sizes = [1, 8], strides = [1, 1]} : vector<1x128xf32> to vector<1x8xf32>
    %194 = arith.addf %190, %193 : vector<1x8xf32>
    %195 = vector.extract_strided_slice %157 {offsets = [0, 72], sizes = [1, 8], strides = [1, 1]} : vector<1x128xf32> to vector<1x8xf32>
    %196 = arith.addf %192, %195 : vector<1x8xf32>
    %197 = vector.extract_strided_slice %160 {offsets = [0, 72], sizes = [1, 8], strides = [1, 1]} : vector<1x128xf32> to vector<1x8xf32>
    %198 = arith.addf %194, %197 : vector<1x8xf32>
    %199 = vector.extract_strided_slice %157 {offsets = [0, 80], sizes = [1, 8], strides = [1, 1]} : vector<1x128xf32> to vector<1x8xf32>
    %200 = arith.addf %196, %199 : vector<1x8xf32>
    %201 = vector.extract_strided_slice %160 {offsets = [0, 80], sizes = [1, 8], strides = [1, 1]} : vector<1x128xf32> to vector<1x8xf32>
    %202 = arith.addf %198, %201 : vector<1x8xf32>
    %203 = vector.extract_strided_slice %157 {offsets = [0, 88], sizes = [1, 8], strides = [1, 1]} : vector<1x128xf32> to vector<1x8xf32>
    %204 = arith.addf %200, %203 : vector<1x8xf32>
    %205 = vector.extract_strided_slice %160 {offsets = [0, 88], sizes = [1, 8], strides = [1, 1]} : vector<1x128xf32> to vector<1x8xf32>
    %206 = arith.addf %202, %205 : vector<1x8xf32>
    %207 = vector.extract_strided_slice %157 {offsets = [0, 96], sizes = [1, 8], strides = [1, 1]} : vector<1x128xf32> to vector<1x8xf32>
    %208 = arith.addf %204, %207 : vector<1x8xf32>
    %209 = vector.extract_strided_slice %160 {offsets = [0, 96], sizes = [1, 8], strides = [1, 1]} : vector<1x128xf32> to vector<1x8xf32>
    %210 = arith.addf %206, %209 : vector<1x8xf32>
    %211 = vector.extract_strided_slice %157 {offsets = [0, 104], sizes = [1, 8], strides = [1, 1]} : vector<1x128xf32> to vector<1x8xf32>
    %212 = arith.addf %208, %211 : vector<1x8xf32>
    %213 = vector.extract_strided_slice %160 {offsets = [0, 104], sizes = [1, 8], strides = [1, 1]} : vector<1x128xf32> to vector<1x8xf32>
    %214 = arith.addf %210, %213 : vector<1x8xf32>
    %215 = vector.extract_strided_slice %157 {offsets = [0, 112], sizes = [1, 8], strides = [1, 1]} : vector<1x128xf32> to vector<1x8xf32>
    %216 = arith.addf %212, %215 : vector<1x8xf32>
    %217 = vector.extract_strided_slice %160 {offsets = [0, 112], sizes = [1, 8], strides = [1, 1]} : vector<1x128xf32> to vector<1x8xf32>
    %218 = arith.addf %214, %217 : vector<1x8xf32>
    %219 = vector.extract_strided_slice %157 {offsets = [0, 120], sizes = [1, 8], strides = [1, 1]} : vector<1x128xf32> to vector<1x8xf32>
    %220 = arith.addf %216, %219 : vector<1x8xf32>
    %221 = vector.extract_strided_slice %160 {offsets = [0, 120], sizes = [1, 8], strides = [1, 1]} : vector<1x128xf32> to vector<1x8xf32>
    %222 = arith.addf %218, %221 : vector<1x8xf32>
    %cst_45 = arith.constant 0.001953125 : f32
    %223 = vector.broadcast %cst_45 : f32 to vector<1x8xf32>
    %224 = arith.mulf %220, %223 : vector<1x8xf32>
    %cst_46 = arith.constant 0.001953125 : f32
    %225 = vector.broadcast %cst_46 : f32 to vector<1x8xf32>
    %226 = arith.mulf %222, %225 : vector<1x8xf32>
    %227 = arith.mulf %224, %224 : vector<1x8xf32>
    %228 = arith.subf %226, %227 : vector<1x8xf32>
    %cst_47 = arith.constant 9.99999974E-6 : f32
    %229 = vector.broadcast %cst_47 : f32 to vector<1x8xf32>
    %230 = arith.addf %228, %229 : vector<1x8xf32>
    %231 = math.rsqrt %230 : vector<1x8xf32>
    %232 = tpu.concatenate %224, %224, %224, %224, %224, %224, %224, %224, %224, %224, %224, %224, %224, %224, %224, %224 in 1 : vector<1x8xf32>, vector<1x8xf32>, vector<1x8xf32>, vector<1x8xf32>, vector<1x8xf32>, vector<1x8xf32>, vector<1x8xf32>, vector<1x8xf32>, vector<1x8xf32>, vector<1x8xf32>, vector<1x8xf32>, vector<1x8xf32>, vector<1x8xf32>, vector<1x8xf32>, vector<1x8xf32>, vector<1x8xf32> -> vector<1x128xf32>
    %233 = tpu.concatenate %231, %231, %231, %231, %231, %231, %231, %231, %231, %231, %231, %231, %231, %231, %231, %231 in 1 : vector<1x8xf32>, vector<1x8xf32>, vector<1x8xf32>, vector<1x8xf32>, vector<1x8xf32>, vector<1x8xf32>, vector<1x8xf32>, vector<1x8xf32>, vector<1x8xf32>, vector<1x8xf32>, vector<1x8xf32>, vector<1x8xf32>, vector<1x8xf32>, vector<1x8xf32>, vector<1x8xf32>, vector<1x8xf32> -> vector<1x128xf32>
    %234 = vector.broadcast %232 : vector<1x128xf32> to vector<32x128xf32>
    %235 = arith.subf %153, %234 : vector<32x128xf32>
    %236 = arith.mulf %233, %154 : vector<1x128xf32>
    %237 = vector.broadcast %236 : vector<1x128xf32> to vector<32x128xf32>
    %238 = arith.mulf %235, %237 : vector<32x128xf32>
    %239 = vector.broadcast %155 : vector<1x128xf32> to vector<32x128xf32>
    %240 = arith.addf %238, %239 : vector<32x128xf32>
    %241 = arith.addf %5, %240 : vector<32x128xf32>
    %c0_48 = arith.constant 0 : index
    %c0_49 = arith.constant 0 : index
    %242 = vector.load %arg10[%c0_48, %c0_49] : memref<32x128xf32, #tpu.memory_space<vmem>>, vector<32x128xf32>
    tpu.vector_store %arg10[%c0_48, %c0_49], %241 {strides = array<i32>} : memref<32x128xf32, #tpu.memory_space<vmem>>, vector<32x128xf32>,
    return
  }
}

</mosaic_0001>

<bundles_post_ra>
// kernel: tpu_custom_call.1
= control target key start
LH: loop header
LB: loop body
LE: loop exit
PB: predicated region body
PF: predicated region fallthrough
CT: control target
= control target key end

     0   :  { %15 = vsyncpa [#allocation3], 0  ;;  %s2519_s0 = inlined_call_operand.vmem [shape: f32[32,72], index: 0, kind: input, shape index: {}]   ;;  %s2520_s1 = inlined_call_operand.vmem [shape: f32[32,1], index: 1, kind: input, shape index: {}]   ;;  %s2521_s2 = inlined_call_operand.vmem [shape: f32[32,1], index: 2, kind: input, shape index: {}]   ;;  %s2522_s3 = inlined_call_operand.hbm [shape: bf16[3,72,128], index: 3, kind: input, shape index: {}]   ;;  %s2523_s4 = inlined_call_operand.hbm [shape: bf16[3,144,128], index: 4, kind: input, shape index: {}]   ;;  %s2524_s5 = inlined_call_operand.vmem [shape: bf16[72,128], index: 5, kind: input, shape index: {}]   ;;  %s2525_s6 = inlined_call_operand.vmem [shape: f32[1,128], index: 6, kind: input, shape index: {}]   ;;  %s2526_s7 = inlined_call_operand.vmem [shape: f32[1,128], index: 7, kind: input, shape index: {}]   ;;  %s2527_s8 = inlined_call_operand.vmem [shape: f32[1,128], index: 8, kind: input, shape index: {}]   ;;  %s2528_s9 = inlined_call_operand.vmem [shape: f32[1,128], index: 9, kind: input, shape index: {}]   ;;  %s2529_s10 = inlined_call_operand.hbm [shape: f32[32,128], index: 10, kind: output, shape index: {}]  }
   0x1   :  { %16 = vsyncpa [#allocation6], 0 }
   0x2   :  { %17 = vsyncpa [#allocation4], 0  ;;  %s28_s15 = sshll.u32 %s2522_s3, 4  ;;  %s1944_s16 = smov [#allocation2]   ;;  %s29_s15 = int_to_ptr.hbm [resolvable:$true] %s28_s15 }
   0x3   :  { %s30_s17 = sshll.u32 %s1944_s16, 4  ;;  %s41_s20 = sshll.u32 %s2523_s4, 4  ;;  %s31_s17 = int_to_ptr.vmem [resolvable:$true] %s30_s17  ;;  %s42_s20 = int_to_ptr.hbm [resolvable:$true] %s41_s20 }
   0x4   :  { %s1945_s21 = smov 64   ;;  %s1946_s22 = smov 4  }
   0x5   :  { %36 = dma.hbm_to_vmem [thread:$0]  %s29_s15, 1728, %s31_s17, [#allocation3], %s1945_s21, %s1945_s21, %s1946_s22  }
   0x6   :  { %s1947_s23 = smov [#allocation5]  }
   0x7   :  { %s43_s24 = sshll.u32 %s1947_s23, 4  ;;  %s44_s24 = int_to_ptr.vmem [resolvable:$true] %s43_s24 }
   0x8   :  { %49 = dma.hbm_to_vmem [thread:$0]  %s42_s20, 3456, %s44_s24, [#allocation6], %s1945_s21, %s1945_s21, %s1946_s22  }
   0x9   :  { %1938 = dma.done.wait [#allocation3], 1728  }
   0xa   :  { %1939 = vsyncadd [#allocation3], 4294965568 }
   0xb   :  { %1940 = dma.done.wait [#allocation6], 3456  }
   0xc   :  { %1941 = vsyncadd [#allocation6], 4294963840  ;;  %v1948_v0 = vmov 0   ;;  %v77_v1 = vld [vmem:[%s2521_s2] sm:$0xff]  ;;  %v79_v3 = vld [vmem:[%s2521_s2 + $0x10] sm:$0xff]  ;;  %vm241_vm0 = vcmask 1043456  }
   0xd   :  { %1858 = vset.pattern.permute.xlu1 %v1948_v0  ;;  %1857 = vset.pattern.permute.xlu0 %v1948_v0  ;;  %v73_v2 = vld [vmem:[%s2520_s1] sm:$0xff]  ;;  %v330_v7 = vld [vmem:[#allocation2 + $0x68] sm:$0xf]  ;;  %v80_v16 = vld [vmem:[%s2521_s2 + $0x18] sm:$0xff]  ;;  %vm234_vm1 = vcmask 588800   ;;  %vm96_vm2 = vcmask 1040384  }
   0xe   :  { %1859 = vset.pattern.permute.xlu2 %v1948_v0  ;;  %160 = vperm.xlu0 %1857, %v77_v1   ;;  %v206_v4 = vld [vmem:[#allocation2 + $0x44] sm:$0xf]  ;;  %v196_v6 = vld [vmem:[#allocation2 + $0x20] sm:$0xf]  ;;  %v348_v9 = vunpack.c.l.b16 %v330_v7  ;;  %v78_v11 = vld [vmem:[%s2521_s2 + $0x8] sm:$0xff]  ;;  %vm109_vm3 = vcmask 1046528  }
   0xf   :  { %128 = vperm.xlu1 %1858, %v73_v2   ;;  %170 = vperm.xlu2 %1859, %v79_v3   ;;  %v224_v5 = vunpack.c.l.b16 %v206_v4  ;;  %v281_v8 = vunpack.c.l.b16 %v196_v6  ;;  %v74_v12 = vld [vmem:[%s2520_s1 + $0x8] sm:$0xff]  ;;  %v1798_v17 = vld [vmem:[#allocation2 + $0x3c] sm:$0xff]  ;;  %v1797_v22 = vld [vmem:[#allocation2 + $0x34] sm:$0xff]  ;;  %s1950_s4 = smov 112   ;;  %s1951_s25 = smov 120   ;;  %vm597_vm7 = vcmask 64512  }
  0x10   :  { %v353_v14 = vpack.c.b16 %v348_v9, %v348_v9  ;;  %v1794_v20 = vld [vmem:[#allocation2 + $0x18] sm:$0xff]  ;;  %v1802_v21 = vld [vmem:[#allocation2 + $0x60] sm:$0xff]  ;;  %v75_v23 = vld [vmem:[%s2520_s1 + $0x10] sm:$0xff]  ;;  %s1952_s26 = smov 80   ;;  %s1953_s27 = smov 88   ;;  %vm599_vm8 = vcmask 130048  }
  0x11   :  { %v229_v10 = vpack.c.b16 %v224_v5, %v224_v5  ;;  %v286_v13 = vpack.c.b16 %v281_v8, %v281_v8  ;;  %v76_v24 = vld [vmem:[%s2520_s1 + $0x18] sm:$0xff]  ;;  %v1796_v25 = vld [vmem:[#allocation2 + $0x2c] sm:$0xff]  ;;  %v1795_v28 = vld [vmem:[#allocation2 + $0x24] sm:$0xff]  ;;  %s1954_s28 = smov 96   ;;  %s1955_s29 = smov 56   ;;  %vm601_vm9 = vcmask 195584  }
  0x12   :  { %v365_v19 = vsel %vm241_vm0, %v353_v14, 0  ;;  %v1793_v26 = vld [vmem:[#allocation2 + $0x10] sm:$0xff]  ;;  %v1801_v27 = vld [vmem:[#allocation2 + $0x58] sm:$0xff]  ;;  %v1792_v29 = vld [vmem:[#allocation2 + $0x8] sm:$0xff]  ;;  %s1956_s30 = smov 72   ;;  %s1957_s11 = smov 32  }
  0x13   :  { %v243_v15 = vsel %vm241_vm0, %v229_v10, 0  ;;  %v298_v18 = vsel %vm241_vm0, %v286_v13, 0  ;;  %370 = vmatpush.bf16.msra.mxu2 %v365_v19  ;;  %v1800_v30 = vld [vmem:[#allocation2 + $0x50] sm:$0xff]  ;;  %v69_v31 = vld [vmem:[%s2519_s0] sm:$0xff]  ;;  %v70_v32 = vld [vmem:[%s2519_s0 + $0x8] sm:$0xff]  ;;  %s1958_s12 = smov 40  }
  0x14   :  { %248 = vmatpush.bf16.msra.mxu0 %v243_v15  ;;  %303 = vmatpush.bf16.msra.mxu1 %v298_v18  ;;  %v2063_v33 = vpack.c.bf16 %v70_v32, %v69_v31  ;;  %v1791_v34 = vld [vmem:[#allocation2] sm:$0xff]  ;;  %v1799_v35 = vld [vmem:[#allocation2 + $0x48] sm:$0xff]  ;;  %v71_v36 = vld [vmem:[%s2519_s0 + $0x10] sm:$0xff]  ;;  %v97_v39 = vrot.slane %v69_v31, 7  ;;  %v110_v40 = vrot.slane %v69_v31, 1  ;;  %v111_v41 = vrot.slane %v70_v32, 1 }
  0x15   :  { %v72_v37 = vld [vmem:[%s2519_s0 + $0x18] sm:$0xff]  ;;  %v98_v42 = vrot.slane %v70_v32, 7  ;;  %v113_v43 = vrot.slane %v71_v36, 1  ;;  %v100_v61 = vrot.slane %v71_v36, 7  ;;  %s1949_s0 = smov 104   ;;  %s1959_s13 = smov 48  }
  0x16   :  { %165 = vperm.xlu0 %1857, %v78_v11   ;;  %v2073_v38 = vpack.c.bf16 %v72_v37, %v71_v36  ;;  %v108_v45 = vsel %vm96_vm2, %v69_v31, %v97_v39  ;;  %v112_v46 = vsel %vm109_vm3, %v110_v40, %v111_v41  ;;  %v115_v62 = vrot.slane %v72_v37, 1  ;;  %s1960_s14 = smov 16   ;;  %s1961_s15 = smov 24  }
  0x17   :  { %133 = vperm.xlu1 %1858, %v74_v12   ;;  %175 = vperm.xlu2 %1859, %v80_v16   ;;  %v99_v48 = vsel %vm96_vm2, %v97_v39, %v98_v42  ;;  %v114_v49 = vsel %vm109_vm3, %v111_v41, %v113_v43  ;;  %v154_v50 = vsub.f32 %v108_v45, %v112_v46  ;;  %v102_v63 = vrot.slane %v72_v37, 7  ;;  %s1962_s16 = smov 8  }
  0x18   :  { %249 = vmatpush.bf16.msra.mxu0 %v1798_v17  ;;  %304 = vmatpush.bf16.msra.mxu1 %v1794_v20  ;;  %v122_v51 = vsub.f32 %v112_v46, %v108_v45  ;;  %v155_v52 = vsub.f32 %v99_v48, %v114_v49  ;;  %v123_v53 = vsub.f32 %v114_v49, %v99_v48  ;;  %vm603_vm10 = vcmask 261120  }
  0x19   :  { %371 = vmatpush.bf16.msra.mxu2 %v1802_v21  ;;  %v101_v6 = vsel %vm96_vm2, %v98_v42, %v100_v61  ;;  %v116_v7 = vsel %vm109_vm3, %v113_v43, %v115_v62  ;;  %v103_v8 = vsel %vm96_vm2, %v100_v61, %v102_v63  ;;  %v121_v9 = vsel %vm109_vm3, %v115_v62, %v72_v37 }
  0x1a   :  { %v156_v10 = vsub.f32 %v101_v6, %v116_v7  ;;  %v157_v12 = vsub.f32 %v103_v8, %v121_v9  ;;  %v124_v13 = vsub.f32 %v116_v7, %v101_v6  ;;  %v125_v14 = vsub.f32 %v121_v9, %v103_v8 }
  0x1b   :  { %vm605_vm11 = vcmask 326656   ;;  %vm607_vm12 = vcmask 392192   ;;  %vm2531_vm13 = vcmask 457728   ;;  %vm2530_vm14 = vcmask 523264  }
  0x1c   :  { %250 = vmatpush.bf16.msra.mxu0 %v1797_v22  ;;  %305 = vmatpush.bf16.msra.mxu1 %v1793_v26  ;;  %vm614_vm15 = vcmask 654336  }
  0x1d   :  { %372 = vmatpush.bf16.msra.mxu2 %v1801_v27 }
  0x1e   :  { %138 = vperm.xlu0 %1857, %v75_v23  }
  0x1f   :  { %143 = vperm.xlu1 %1858, %v76_v24  }
  0x20   :  { %251 = vmatpush.bf16.msra.mxu0 %v1796_v25  ;;  %306 = vmatpush.bf16.msra.mxu1 %v1792_v29 }
  0x21   :  { %373 = vmatpush.bf16.msra.mxu2 %v1800_v30 }
  0x24   :  { %252 = vmatpush.bf16.msra.mxu0 %v1795_v28  ;;  %307 = vmatpush.bf16.msra.mxu1 %v1791_v34 }
  0x25   :  { %374 = vmatpush.bf16.msra.mxu2 %v1799_v35 }
  0x27   :  { %1617 = vmatmul.msk.bf16.vlgmr.msra.gmra.mxu0 %vm234_vm1, %v2063_v33 }
  0x37   :  { %1618 = vmatmul.msk.bf16.gmra.mxu0 %vm234_vm1, %v2073_v38 }
  0x69   :  { %v2087_v56 = vpop.permute.xlu2 %170 }
  0x6a   :  { %v180_v17 = vmul.f32 %v2087_v56, %v156_v10 }
  0x6c   :  { %v184_v21 = vadd.f32 %v180_v17, %v116_v7 }
  0x71   :  { %v2101_v11 = vpop.permute.xlu2 %175 }
  0x72   :  { %v181_v18 = vmul.f32 %v2101_v11, %v157_v12 }
  0x74   :  { %v185_v22 = vadd.f32 %v181_v18, %v121_v9 }
  0x76   :  { %v320_v26 = vpack.c.bf16 %v185_v22, %v184_v21 }
  0x80   :  { %v2077_v44 = vpop.permute.xlu0 %160 }
  0x81   :  { %v2081_v47 = vpop.permute.xlu1 %128  ;;  %v178_v54 = vmul.f32 %v2077_v44, %v154_v50 }
  0x82   :  { %v146_v55 = vmul.f32 %v2081_v47, %v122_v51 }
  0x83   :  { %v182_v0 = vadd.f32 %v178_v54, %v112_v46 }
  0x84   :  { %v150_v1 = vadd.f32 %v146_v55, %v108_v45 }
  0x88   :  { %v2089_v57 = vpop.permute.xlu0 %165 }
  0x89   :  { %v2091_v58 = vpop.permute.xlu1 %133  ;;  %v179_v59 = vmul.f32 %v2089_v57, %v155_v52 }
  0x8a   :  { %v147_v60 = vmul.f32 %v2091_v58, %v123_v53 }
  0x8b   :  { %v183_v2 = vadd.f32 %v179_v59, %v114_v49 }
  0x8c   :  { %v151_v3 = vadd.f32 %v147_v60, %v99_v48 }
  0x8d   :  { %v319_v5 = vpack.c.bf16 %v183_v2, %v182_v0 }
  0x8e   :  { %v186_v4 = vpack.c.bf16 %v151_v3, %v150_v1 }
  0x8f   :  { %1653 = vmatmul.msk.bf16.vlgmr.msra.gmra.mxu2 %vm234_vm1, %v319_v5 }
  0x90   :  { %1635 = vmatmul.msk.bf16.vlgmr.msra.gmra.mxu1 %vm234_vm1, %v186_v4  ;;  %v2103_v15 = vpop.permute.xlu0 %138 }
  0x91   :  { %v2105_v16 = vpop.permute.xlu1 %143  ;;  %v148_v19 = vmul.f32 %v2103_v15, %v124_v13 }
  0x92   :  { %v149_v20 = vmul.f32 %v2105_v16, %v125_v14 }
  0x93   :  { %v152_v23 = vadd.f32 %v148_v19, %v101_v6 }
  0x94   :  { %v153_v24 = vadd.f32 %v149_v20, %v103_v8 }
  0x96   :  { %v187_v25 = vpack.c.bf16 %v153_v24, %v152_v23 }
  0x9f   :  { %1654 = vmatmul.msk.bf16.gmra.mxu2 %vm234_vm1, %v320_v26 }
  0xa0   :  { %1636 = vmatmul.msk.bf16.gmra.mxu1 %vm234_vm1, %v187_v25 }
  0xa4   :  { %v254_v27 = vpop.f32.mrf.mxu0 }
  0xac   :  { %v256_v30 = vpop.f32.mrf.mxu0 }
  0xb4   :  { %v259_v35 = vpop.f32.mrf.mxu0 }
  0xbc   :  { %v261_v46 = vpop.f32.mrf.mxu0 }
 0x10d   :  { %v309_v28 = vpop.f32.mrf.mxu1 }
 0x10e   :  { %v310_v39 = vadd.f32 %v309_v28, %v254_v27 }
 0x112   :  { %v376_v29 = vpop.f32.mrf.mxu2 }
 0x113   :  { %v2115_v43 = vadd.f32 %v376_v29, %v310_v39 }
 0x115   :  { %v311_v31 = vpop.f32.mrf.mxu1  ;;  %v401_v0 = vmul.f32 %v2115_v43, %v2115_v43 }
 0x116   :  { %v312_v37 = vadd.f32 %v311_v31, %v256_v30 }
 0x11a   :  { %v378_v32 = vpop.f32.mrf.mxu2 }
 0x11b   :  { %v2113_v40 = vadd.f32 %v378_v32, %v312_v37 }
 0x11d   :  { %v314_v34 = vpop.f32.mrf.mxu1  ;;  %v392_v48 = vadd.f32 %v2113_v40, %v2115_v43  ;;  %v402_v62 = vmul.f32 %v2113_v40, %v2113_v40 }
 0x11e   :  { %v315_v41 = vadd.f32 %v314_v34, %v259_v35 }
 0x11f   :  { %v405_v2 = vadd.f32 %v402_v62, %v401_v0 }
 0x122   :  { %v381_v36 = vpop.f32.mrf.mxu2 }
 0x123   :  { %v2117_v45 = vadd.f32 %v381_v36, %v315_v41 }
 0x125   :  { %v316_v42 = vpop.f32.mrf.mxu1  ;;  %v393_v51 = vadd.f32 %v392_v48, %v2117_v45  ;;  %v403_v1 = vmul.f32 %v2117_v45, %v2117_v45 }
 0x126   :  { %v317_v49 = vadd.f32 %v316_v42, %v261_v46 }
 0x127   :  { %v406_v4 = vadd.f32 %v405_v2, %v403_v1 }
 0x12a   :  { %v383_v50 = vpop.f32.mrf.mxu2 }
 0x12b   :  { %v2122_v52 = vadd.f32 %v383_v50, %v317_v49 }
 0x12d   :  { %v394_v53 = vadd.f32 %v393_v51, %v2122_v52  ;;  %v404_v3 = vmul.f32 %v2122_v52, %v2122_v52 }
 0x12f   :  { %v395_v54 = vrot.slane %v394_v53, 4  ;;  %v407_v5 = vadd.f32 %v406_v4, %v404_v3 }
 0x131   :  { %v396_v55 = vadd.f32 %v395_v54, %v394_v53  ;;  %v408_v6 = vrot.slane %v407_v5, 4 }
 0x133   :  { %v397_v59 = vrot.slane %v396_v55, 2  ;;  %v409_v7 = vadd.f32 %v408_v6, %v407_v5 }
 0x135   :  { %v398_v60 = vadd.f32 %v397_v59, %v396_v55  ;;  %v410_v8 = vrot.slane %v409_v7, 2 }
 0x137   :  { %v399_v61 = vrot.slane %v398_v60, 1  ;;  %v411_v9 = vadd.f32 %v410_v8, %v409_v7 }
 0x139   :  { %v2127_v63 = vadd.f32 %v399_v61, %v398_v60  ;;  %v412_v10 = vrot.slane %v411_v9, 1 }
 0x13b   :  { %432 = vrot.lane.b32.xlu0 %v2127_v63, %s1949_s0  ;;  %424 = vrot.lane.b32.xlu1 %v2127_v63, %s1950_s4  ;;  %v413_v12 = vadd.f32 %v412_v10, %v411_v9 }
 0x13c   :  { %415 = vrot.lane.b32.xlu2 %v2127_v63, %s1951_s25 }
 0x143   :  { %456 = vrot.lane.b32.xlu0 %v2127_v63, %s1952_s26  ;;  %448 = vrot.lane.b32.xlu1 %v2127_v63, %s1953_s27 }
 0x144   :  { %440 = vrot.lane.b32.xlu2 %v2127_v63, %s1954_s28 }
 0x14b   :  { %480 = vrot.lane.b32.xlu0 %v2127_v63, %s1955_s29  ;;  %472 = vrot.lane.b32.xlu1 %v2127_v63, %s1945_s21 }
 0x14c   :  { %464 = vrot.lane.b32.xlu2 %v2127_v63, %s1956_s30 }
 0x153   :  { %504 = vrot.lane.b32.xlu0 %v2127_v63, %s1957_s11  ;;  %496 = vrot.lane.b32.xlu1 %v2127_v63, %s1958_s12 }
 0x154   :  { %488 = vrot.lane.b32.xlu2 %v2127_v63, %s1959_s13 }
 0x15b   :  { %420 = vrot.lane.b32.xlu0 %v413_v12, %s1951_s25  ;;  %520 = vrot.lane.b32.xlu1 %v2127_v63, %s1960_s14 }
 0x15c   :  { %512 = vrot.lane.b32.xlu2 %v2127_v63, %s1961_s15 }
 0x163   :  { %444 = vrot.lane.b32.xlu0 %v413_v12, %s1954_s28  ;;  %436 = vrot.lane.b32.xlu1 %v413_v12, %s1949_s0 }
 0x164   :  { %428 = vrot.lane.b32.xlu2 %v413_v12, %s1950_s4 }
 0x16b   :  { %468 = vrot.lane.b32.xlu0 %v413_v12, %s1956_s30  ;;  %460 = vrot.lane.b32.xlu1 %v413_v12, %s1952_s26 }
 0x16c   :  { %452 = vrot.lane.b32.xlu2 %v413_v12, %s1953_s27 }
 0x173   :  { %492 = vrot.lane.b32.xlu0 %v413_v12, %s1959_s13  ;;  %484 = vrot.lane.b32.xlu1 %v413_v12, %s1955_s29 }
 0x174   :  { %476 = vrot.lane.b32.xlu2 %v413_v12, %s1945_s21 }
 0x17b   :  { %516 = vrot.lane.b32.xlu0 %v413_v12, %s1961_s15  ;;  %508 = vrot.lane.b32.xlu1 %v413_v12, %s1957_s11 }
 0x17c   :  { %500 = vrot.lane.b32.xlu2 %v413_v12, %s1958_s12 }
 0x183   :  { %528 = vrot.lane.b32.xlu0 %v2127_v63, %s1962_s16  ;;  %532 = vrot.lane.b32.xlu1 %v413_v12, %s1962_s16 }
 0x184   :  { %524 = vrot.lane.b32.xlu2 %v413_v12, %s1960_s14 }
 0x196   :  { %v416_v13 = vpop.permute.xlu2 %415 }
 0x197   :  { %v418_v28 = vadd.f32 %v416_v13, %v2127_v63 }
 0x19e   :  { %v441_v14 = vpop.permute.xlu2 %440 }
 0x1a6   :  { %v465_v17 = vpop.permute.xlu2 %464 }
 0x1ad   :  { %v433_v18 = vpop.permute.xlu0 %432  ;;  %v425_v19 = vpop.permute.xlu1 %424 }
 0x1ae   :  { %v489_v22 = vpop.permute.xlu2 %488  ;;  %v427_v30 = vadd.f32 %v425_v19, %v418_v28 }
 0x1b0   :  { %v435_v34 = vadd.f32 %v433_v18, %v427_v30 }
 0x1b2   :  { %v443_v36 = vadd.f32 %v441_v14, %v435_v34 }
 0x1b5   :  { %v457_v20 = vpop.permute.xlu0 %456  ;;  %v449_v21 = vpop.permute.xlu1 %448 }
 0x1b6   :  { %v513_v25 = vpop.permute.xlu2 %512  ;;  %v451_v46 = vadd.f32 %v449_v21, %v443_v36 }
 0x1b8   :  { %v459_v50 = vadd.f32 %v457_v20, %v451_v46 }
 0x1ba   :  { %v467_v55 = vadd.f32 %v465_v17, %v459_v50 }
 0x1bd   :  { %v481_v23 = vpop.permute.xlu0 %480  ;;  %v473_v24 = vpop.permute.xlu1 %472 }
 0x1be   :  { %v429_v29 = vpop.permute.xlu2 %428  ;;  %v475_v61 = vadd.f32 %v473_v24, %v467_v55 }
 0x1c0   :  { %v483_v63 = vadd.f32 %v481_v23, %v475_v61 }
 0x1c2   :  { %v491_v4 = vadd.f32 %v489_v22, %v483_v63 }
 0x1c5   :  { %v505_v26 = vpop.permute.xlu0 %504  ;;  %v497_v27 = vpop.permute.xlu1 %496 }
 0x1c6   :  { %v453_v37 = vpop.permute.xlu2 %452  ;;  %v499_v7 = vadd.f32 %v497_v27, %v491_v4 }
 0x1cd   :  { %v421_v31 = vpop.permute.xlu0 %420  ;;  %v521_v32 = vpop.permute.xlu1 %520 }
 0x1ce   :  { %v423_v35 = vadd.f32 %v421_v31, %v413_v12  ;;  %v477_v60 = vpop.permute.xlu2 %476  ;;  %v507_v12 = vadd.f32 %v505_v26, %v499_v7 }
 0x1d0   :  { %v431_v39 = vadd.f32 %v429_v29, %v423_v35  ;;  %v515_v17 = vadd.f32 %v513_v25, %v507_v12 }
 0x1d2   :  { %v523_v19 = vadd.f32 %v521_v32, %v515_v17 }
 0x1d5   :  { %v445_v41 = vpop.permute.xlu0 %444  ;;  %v437_v42 = vpop.permute.xlu1 %436 }
 0x1d6   :  { %v439_v48 = vadd.f32 %v437_v42, %v431_v39  ;;  %v501_v6 = vpop.permute.xlu2 %500 }
 0x1d8   :  { %v447_v49 = vadd.f32 %v445_v41, %v439_v48 }
 0x1da   :  { %v455_v51 = vadd.f32 %v453_v37, %v447_v49 }
 0x1dd   :  { %v469_v53 = vpop.permute.xlu0 %468  ;;  %v461_v54 = vpop.permute.xlu1 %460 }
 0x1de   :  { %v463_v59 = vadd.f32 %v461_v54, %v455_v51  ;;  %v525_v18 = vpop.permute.xlu2 %524 }
 0x1e0   :  { %v471_v62 = vadd.f32 %v469_v53, %v463_v59 }
 0x1e2   :  { %v479_v0 = vadd.f32 %v477_v60, %v471_v62 }
 0x1e5   :  { %v493_v1 = vpop.permute.xlu0 %492  ;;  %v485_v2 = vpop.permute.xlu1 %484 }
 0x1e6   :  { %v487_v3 = vadd.f32 %v485_v2, %v479_v0 }
 0x1e8   :  { %v495_v5 = vadd.f32 %v493_v1, %v487_v3 }
 0x1ea   :  { %v503_v8 = vadd.f32 %v501_v6, %v495_v5 }
 0x1ed   :  { %v517_v9 = vpop.permute.xlu0 %516  ;;  %v509_v10 = vpop.permute.xlu1 %508 }
 0x1ee   :  { %v511_v13 = vadd.f32 %v509_v10, %v503_v8 }
 0x1f0   :  { %v519_v14 = vadd.f32 %v517_v9, %v511_v13 }
 0x1f2   :  { %v527_v20 = vadd.f32 %v525_v18, %v519_v14 }
 0x1f5   :  { %v529_v21 = vpop.permute.xlu0 %528  ;;  %v533_v23 = vpop.permute.xlu1 %532 }
 0x1f6   :  { %v531_v24 = vadd.f32 %v529_v21, %v523_v19  ;;  %v535_v28 = vadd.f32 %v533_v23, %v527_v20 }
 0x1f8   :  { %v2181_v29 = vmul.f32 0.001953125, %v531_v24  ;;  %v537_v22 = vmul.f32 0.001953125, %v535_v28 }
 0x1fa   :  { %v538_v27 = vmul.f32 %v2181_v29, %v2181_v29  ;;  %558 = vrot.lane.b32.xlu0 %v2181_v29, %s1961_s15  ;;  %555 = vrot.lane.b32.xlu1 %v2181_v29, %s1960_s14 }
 0x1fb   :  { %552 = vrot.lane.b32.xlu2 %v2181_v29, %s1962_s16 }
 0x1fc   :  { %v539_v25 = vsub.f32 %v537_v22, %v538_v27 }
 0x1fe   :  { %v540_v26 = vadd.f32 1e-05, %v539_v25 }
 0x200   :  { %1862 = vrsqrt.f32 %v540_v26  ;;  %vm547_vm5 = vweird.f32 %v540_v26 }
 0x202   :  { %567 = vrot.lane.b32.xlu0 %v2181_v29, %s1959_s13  ;;  %564 = vrot.lane.b32.xlu1 %v2181_v29, %s1958_s12 }
 0x203   :  { %561 = vrot.lane.b32.xlu2 %v2181_v29, %s1957_s11 }
 0x206   :  { %v1863_v30 = vpop.eup %1862 }
 0x207   :  { %v542_v31 = vmul.f32 %v1863_v30, %v540_v26  ;;  %vm548_vm4 = vweird.f32 %v1863_v30 }
 0x208   :  { %vm549_vm6 = vmor %vm547_vm5, %vm548_vm4  ;;  %vm616_vm4 = vcmask 719872   ;;  %vm618_vm5 = vcmask 785408  }
 0x209   :  { %v543_v32 = vmul.f32 %v1863_v30, %v542_v31 }
 0x20a   :  { %576 = vrot.lane.b32.xlu0 %v2181_v29, %s1956_s30  ;;  %573 = vrot.lane.b32.xlu1 %v2181_v29, %s1945_s21 }
 0x20b   :  { %570 = vrot.lane.b32.xlu2 %v2181_v29, %s1955_s29  ;;  %v544_v34 = vmul.f32 0.5, %v543_v32 }
 0x20d   :  { %v545_v35 = vsub.f32 1.5, %v544_v34 }
 0x20f   :  { %v546_v36 = vmul.f32 %v1863_v30, %v545_v35 }
 0x211   :  { %v550_v37 = vsel %vm549_vm6, %v1863_v30, %v546_v36  ;;  %vm620_vm6 = vcmask 850944  }
 0x212   :  { %585 = vrot.lane.b32.xlu0 %v2181_v29, %s1954_s28  ;;  %582 = vrot.lane.b32.xlu1 %v2181_v29, %s1953_s27 }
 0x213   :  { %579 = vrot.lane.b32.xlu2 %v2181_v29, %s1952_s26 }
 0x21a   :  { %591 = vrot.lane.b32.xlu1 %v2181_v29, %s1950_s4  ;;  %627 = vrot.lane.b32.xlu0 %v550_v37, %s1962_s16 }
 0x21b   :  { %588 = vrot.lane.b32.xlu2 %v2181_v29, %s1949_s0 }
 0x222   :  { %633 = vrot.lane.b32.xlu1 %v550_v37, %s1961_s15  ;;  %636 = vrot.lane.b32.xlu0 %v550_v37, %s1957_s11 }
 0x223   :  { %630 = vrot.lane.b32.xlu2 %v550_v37, %s1960_s14 }
 0x22a   :  { %642 = vrot.lane.b32.xlu1 %v550_v37, %s1959_s13  ;;  %645 = vrot.lane.b32.xlu0 %v550_v37, %s1955_s29 }
 0x22b   :  { %639 = vrot.lane.b32.xlu2 %v550_v37, %s1958_s12 }
 0x232   :  { %651 = vrot.lane.b32.xlu1 %v550_v37, %s1956_s30  ;;  %654 = vrot.lane.b32.xlu0 %v550_v37, %s1952_s26 }
 0x233   :  { %648 = vrot.lane.b32.xlu2 %v550_v37, %s1945_s21 }
 0x23a   :  { %660 = vrot.lane.b32.xlu1 %v550_v37, %s1954_s28  ;;  %663 = vrot.lane.b32.xlu0 %v550_v37, %s1949_s0 }
 0x23b   :  { %657 = vrot.lane.b32.xlu2 %v550_v37, %s1953_s27 }
 0x242   :  { %669 = vrot.lane.b32.xlu1 %v550_v37, %s1951_s25  ;;  %594 = vrot.lane.b32.xlu0 %v2181_v29, %s1951_s25 }
 0x243   :  { %666 = vrot.lane.b32.xlu2 %v550_v37, %s1950_s4 }
 0x255   :  { %v553_v39 = vpop.permute.xlu2 %552 }
 0x256   :  { %v598_v4 = vsel %vm597_vm7, %v2181_v29, %v553_v39 }
 0x25d   :  { %v562_v41 = vpop.permute.xlu2 %561 }
 0x265   :  { %v571_v48 = vpop.permute.xlu2 %570 }
 0x26c   :  { %v559_v42 = vpop.permute.xlu0 %558  ;;  %v556_v46 = vpop.permute.xlu1 %555 }
 0x26d   :  { %v580_v51 = vpop.permute.xlu2 %579  ;;  %v600_v5 = vsel %vm599_vm8, %v598_v4, %v556_v46 }
 0x26e   :  { %v602_v8 = vsel %vm601_vm9, %v600_v5, %v559_v42 }
 0x26f   :  { %v604_v13 = vsel %vm603_vm10, %v602_v8, %v562_v41 }
 0x274   :  { %v568_v49 = vpop.permute.xlu0 %567  ;;  %v565_v50 = vpop.permute.xlu1 %564 }
 0x275   :  { %v589_v55 = vpop.permute.xlu2 %588  ;;  %v606_v14 = vsel %vm605_vm11, %v604_v13, %v565_v50 }
 0x276   :  { %v608_v20 = vsel %vm607_vm12, %v606_v14, %v568_v49 }
 0x277   :  { %v610_v28 = vsel %vm2531_vm13, %v608_v20, %v571_v48  ;;  %v390_v48 = vld [vmem:[%s2525_s6] sm:$0x1]  ;;  %v1815_v20 = vld [vmem:[#allocation5 + $0x60] sm:$0xff] }
 0x27c   :  { %v577_v53 = vpop.permute.xlu0 %576  ;;  %v574_v54 = vpop.permute.xlu1 %573 }
 0x27d   :  { %v631_v61 = vpop.permute.xlu2 %630  ;;  %v612_v29 = vsel %vm2530_vm14, %v610_v28, %v574_v54  ;;  %v1808_v28 = vld [vmem:[#allocation5 + $0x28] sm:$0xff] }
 0x27e   :  { %v613_v25 = vsel %vm234_vm1, %v612_v29, %v577_v53  ;;  %v1812_v29 = vld [vmem:[#allocation5 + $0x48] sm:$0xff] }
 0x27f   :  { %v615_v31 = vsel %vm614_vm15, %v613_v25, %v580_v51  ;;  %v1806_v25 = vld [vmem:[#allocation5 + $0x18] sm:$0xff] }
 0x284   :  { %v586_v59 = vpop.permute.xlu0 %585  ;;  %v583_v60 = vpop.permute.xlu1 %582 }
 0x285   :  { %v640_v2 = vpop.permute.xlu2 %639  ;;  %v617_v35 = vsel %vm616_vm4, %v615_v31, %v583_v60  ;;  %v1826_v31 = vld [vmem:[#allocation5 + $0xb8] sm:$0xff] }
 0x286   :  { %v619_v39 = vsel %vm618_vm5, %v617_v35, %v586_v59 }
 0x287   :  { %v621_v42 = vsel %vm620_vm6, %v619_v39, %v589_v55  ;;  %v1811_v39 = vld [vmem:[#allocation5 + $0x40] sm:$0xff] }
 0x28c   :  { %v592_v62 = vpop.permute.xlu1 %591  ;;  %v628_v63 = vpop.permute.xlu0 %627 }
 0x28d   :  { %v672_v3 = vsel %vm597_vm7, %v550_v37, %v628_v63  ;;  %v649_v17 = vpop.permute.xlu2 %648 }
 0x28e   :  { %v673_v6 = vsel %vm599_vm8, %v672_v3, %v631_v61 }
 0x294   :  { %v634_v0 = vpop.permute.xlu1 %633  ;;  %v637_v1 = vpop.permute.xlu0 %636 }
 0x295   :  { %v674_v7 = vsel %vm601_vm9, %v673_v6, %v634_v0  ;;  %v658_v26 = vpop.permute.xlu2 %657  ;;  %v1860_v0 = vld [vmem:[%s2526_s7] ss:$0 sm:$0xff] }
 0x296   :  { %v675_v9 = vsel %vm603_vm10, %v674_v7, %v637_v1 }
 0x297   :  { %v676_v18 = vsel %vm605_vm11, %v675_v9, %v640_v2 }
 0x29c   :  { %v643_v10 = vpop.permute.xlu1 %642  ;;  %v646_v12 = vpop.permute.xlu0 %645 }
 0x29d   :  { %v677_v19 = vsel %vm607_vm12, %v676_v18, %v643_v10  ;;  %v667_v46 = vpop.permute.xlu2 %666  ;;  %v1820_v18 = vld [vmem:[#allocation5 + $0x88] sm:$0xff] }
 0x29e   :  { %v678_v21 = vsel %vm2531_vm13, %v677_v19, %v646_v12  ;;  %vm624_vm13 = vcmask 982016   ;;  %v1810_v19 = vld [vmem:[#allocation5 + $0x38] sm:$0xff]  ;;  %1830 = vmatpush.bf16.msrb.mxu2 %v1820_v18  ;;  %992 = vmatpush.bf16.msrb.mxu0 %v1820_v18 }
 0x29f   :  { %v679_v22 = vsel %vm2530_vm14, %v678_v21, %v649_v17  ;;  %vm622_vm14 = vcmask 916480   ;;  %v1816_v17 = vld [vmem:[#allocation5 + $0x68] sm:$0xff]  ;;  %1064 = vmatpush.bf16.msrb.mxu1 %v1810_v19  ;;  %v1814_v21 = vld [vmem:[#allocation5 + $0x58] sm:$0xff] }
 0x2a0   :  { %v623_v49 = vsel %vm622_vm14, %v621_v42, %v592_v62  ;;  %v1819_v62 = vld [vmem:[#allocation5 + $0x80] sm:$0xff] }
 0x2a1   :  { %966 = vmatpush.bf16.msra.mxu3 %v1819_v62 }
 0x2a2   :  { %1090 = vmatpush.bf16.msra.mxu2 %v1811_v39 }
 0x2a4   :  { %v652_v23 = vpop.permute.xlu1 %651  ;;  %v655_v24 = vpop.permute.xlu0 %654 }
 0x2a5   :  { %v680_v27 = vsel %vm234_vm1, %v679_v22, %v652_v23  ;;  %v1809_v23 = vld [vmem:[#allocation5 + $0x30] sm:$0xff]  ;;  %v1807_v22 = vld [vmem:[#allocation5 + $0x20] sm:$0xff] }
 0x2a6   :  { %v681_v30 = vsel %vm614_vm15, %v680_v27, %v655_v24  ;;  %v1813_v24 = vld [vmem:[#allocation5 + $0x50] sm:$0xff]  ;;  %1065 = vmatpush.bf16.msrb.mxu1 %v1809_v23  ;;  %v1828_v27 = vld [vmem:[#allocation5 + $0xc8] sm:$0xff] }
 0x2a7   :  { %v682_v36 = vsel %vm616_vm4, %v681_v30, %v658_v26  ;;  %v1827_v26 = vld [vmem:[#allocation5 + $0xc0] sm:$0xff]  ;;  %v1805_v30 = vld [vmem:[#allocation5 + $0x10] sm:$0xff] }
 0x2aa   :  { %1066 = vmatpush.bf16.msrb.mxu1 %v1808_v28 }
 0x2ac   :  { %v661_v32 = vpop.permute.xlu1 %660  ;;  %v664_v34 = vpop.permute.xlu0 %663 }
 0x2ad   :  { %v683_v37 = vsel %vm618_vm5, %v682_v36, %v661_v32  ;;  %v1804_v32 = vld [vmem:[#allocation5 + $0x8] sm:$0xff]  ;;  %v1803_v36 = vld [vmem:[#allocation5] sm:$0xff] }
 0x2ae   :  { %v684_v41 = vsel %vm620_vm6, %v683_v37, %v664_v34  ;;  %1067 = vmatpush.bf16.msrb.mxu1 %v1807_v22  ;;  %v1825_v34 = vld [vmem:[#allocation5 + $0xb0] sm:$0xff]  ;;  %v1824_v37 = vld [vmem:[#allocation5 + $0xa8] sm:$0xff] }
 0x2af   :  { %v685_v51 = vsel %vm622_vm14, %v684_v41, %v667_v46  ;;  %v1823_v41 = vld [vmem:[#allocation5 + $0xa0] sm:$0xff]  ;;  %v1822_v46 = vld [vmem:[#allocation5 + $0x98] sm:$0xff] }
 0x2b2   :  { %1068 = vmatpush.bf16.msrb.mxu1 %v1806_v25 }
 0x2b4   :  { %v670_v50 = vpop.permute.xlu1 %669  ;;  %v595_v53 = vpop.permute.xlu0 %594 }
 0x2b5   :  { %v686_v54 = vsel %vm624_vm13, %v685_v51, %v670_v50  ;;  %v625_v59 = vsel %vm624_vm13, %v623_v49, %v595_v53  ;;  %v1821_v50 = vld [vmem:[#allocation5 + $0x90] sm:$0xff] }
 0x2b6   :  { %v692_v60 = vmul.f32 %v686_v54, %v390_v48  ;;  %v687_v61 = vperm.slane %v625_v59, 0  ;;  %1069 = vmatpush.bf16.msrb.mxu1 %v1805_v30  ;;  %v1829_v54 = vld [vmem:[#allocation5 + $0xd0] sm:$0xff] }
 0x2b7   :  { %1211 = vmatpush.bf16.msra.mxu0 %v1829_v54 }
 0x2b8   :  { %v693_v63 = vperm.slane %v692_v60, 0  ;;  %v689_v55 = vsub.f32 %v2113_v40, %v687_v61  ;;  %v688_v1 = vsub.f32 %v2115_v43, %v687_v61  ;;  %v690_v4 = vsub.f32 %v2117_v45, %v687_v61  ;;  %v1818_v45 = vld [vmem:[#allocation5 + $0x78] sm:$0xff] }
 0x2b9   :  { %v691_v5 = vsub.f32 %v2122_v52, %v687_v61  ;;  %967 = vmatpush.bf16.msra.mxu3 %v1818_v45  ;;  %v1817_v52 = vld [vmem:[#allocation5 + $0x70] sm:$0xff] }
 0x2ba   :  { %v695_v2 = vmul.f32 %v693_v63, %v689_v55  ;;  %v694_v3 = vmul.f32 %v693_v63, %v688_v1  ;;  %v696_v10 = vmul.f32 %v693_v63, %v690_v4  ;;  %1070 = vmatpush.bf16.msrb.mxu1 %v1804_v32 }
 0x2bb   :  { %v697_v40 = vmul.f32 %v693_v63, %v691_v5 }
 0x2bc   :  { %v702_v6 = vadd.f32 %v1860_v0, %v695_v2  ;;  %v701_v7 = vadd.f32 %v1860_v0, %v694_v3  ;;  %v703_v43 = vadd.f32 %v1860_v0, %v696_v10 }
 0x2bd   :  { %v704_v12 = vadd.f32 %v1860_v0, %v697_v40  ;;  %968 = vmatpush.bf16.msra.mxu3 %v1817_v52 }
 0x2be   :  { %v706_v8 = vmax.f32 %v702_v6, 0.0  ;;  %v705_v9 = vmax.f32 %v701_v7, 0.0  ;;  %v707_v13 = vmax.f32 %v703_v43, 0.0  ;;  %1071 = vmatpush.bf16.msrb.mxu1 %v1803_v36 }
 0x2bf   :  { %v708_v14 = vmax.f32 %v704_v12, 0.0 }
 0x2c0   :  { %715 = vrot.lane.b32.xlu0 %v706_v8, %s1951_s25  ;;  %725 = vrot.lane.b32.xlu1 %v705_v9, %s1962_s16 }
 0x2c1   :  { %713 = vrot.lane.b32.xlu2 %v705_v9, %s1951_s25  ;;  %969 = vmatpush.bf16.msra.mxu3 %v1816_v17 }
 0x2c5   :  { %970 = vmatpush.bf16.msra.mxu3 %v1815_v20 }
 0x2c8   :  { %717 = vrot.lane.b32.xlu0 %v707_v13, %s1951_s25  ;;  %719 = vrot.lane.b32.xlu1 %v708_v14, %s1951_s25 }
 0x2c9   :  { %727 = vrot.lane.b32.xlu2 %v706_v8, %s1962_s16  ;;  %971 = vmatpush.bf16.msra.mxu3 %v1814_v21 }
 0x2cd   :  { %972 = vmatpush.bf16.msra.mxu3 %v1813_v24 }
 0x2d0   :  { %731 = vrot.lane.b32.xlu0 %v708_v14, %s1962_s16  ;;  %741 = vrot.lane.b32.xlu1 %v707_v13, %s1961_s15 }
 0x2d1   :  { %729 = vrot.lane.b32.xlu2 %v707_v13, %s1962_s16  ;;  %973 = vmatpush.bf16.msra.mxu3 %v1812_v29 }
 0x2d5   :  { %1185 = vmatpush.bf16.msrb.mxu3 %v1828_v27 }
 0x2d8   :  { %737 = vrot.lane.b32.xlu0 %v705_v9, %s1961_s15  ;;  %739 = vrot.lane.b32.xlu1 %v706_v8, %s1961_s15 }
 0x2d9   :  { %743 = vrot.lane.b32.xlu2 %v708_v14, %s1961_s15  ;;  %1186 = vmatpush.bf16.msrb.mxu3 %v1827_v26 }
 0x2dd   :  { %1187 = vmatpush.bf16.msrb.mxu3 %v1826_v31 }
 0x2e1   :  { %1188 = vmatpush.bf16.msrb.mxu3 %v1825_v34 }
 0x2e5   :  { %1189 = vmatpush.bf16.msrb.mxu3 %v1824_v37 }
 0x2e9   :  { %1190 = vmatpush.bf16.msrb.mxu3 %v1823_v41 }
 0x2ed   :  { %1191 = vmatpush.bf16.msrb.mxu3 %v1822_v46 }
 0x2f1   :  { %1192 = vmatpush.bf16.msrb.mxu3 %v1821_v50 }
 0x31b   :  { %v714_v35 = vpop.permute.xlu2 %713 }
 0x323   :  { %v728_v42 = vpop.permute.xlu2 %727 }
 0x32b   :  { %v730_v55 = vpop.permute.xlu2 %729 }
 0x332   :  { %v716_v48 = vpop.permute.xlu0 %715  ;;  %v726_v49 = vpop.permute.xlu1 %725 }
 0x333   :  { %v750_v51 = vsel %vm597_vm7, %v716_v48, %v728_v42  ;;  %v749_v53 = vsel %vm597_vm7, %v714_v35, %v726_v49  ;;  %v744_v40 = vpop.permute.xlu2 %743 }
 0x334   :  { %v790_v59 = vrot.slane %v750_v51, 1  ;;  %v765_v60 = vrot.slane %v749_v53, 7  ;;  %v789_v61 = vrot.slane %v749_v53, 1  ;;  %v883_v63 = vpack.c.bf16 %v750_v51, %v749_v53 }
 0x335   :  { %v767_v62 = vrot.slane %v750_v51, 7 }
 0x336   :  { %974 = vmatmul.bf16.vlgmr.msra.gmra.mxu3 %v883_v63  ;;  %v787_v0 = vsel %vm96_vm2, %v749_v53, %v765_v60  ;;  %v2287_v1 = vsel %vm109_vm3, %v789_v61, %v790_v59 }
 0x337   :  { %v813_v5 = vsub.f32 %v2287_v1, %v787_v0  ;;  %v768_v8 = vsel %vm96_vm2, %v765_v60, %v767_v62  ;;  %v837_v32 = vsub.f32 %v787_v0, %v2287_v1 }
 0x339   :  { %v821_v10 = vmul.f32 %v813_v5, %v2081_v47 }
 0x33a   :  { %v718_v2 = vpop.permute.xlu0 %717  ;;  %v720_v3 = vpop.permute.xlu1 %719 }
 0x33b   :  { %v751_v4 = vsel %vm597_vm7, %v718_v2, %v730_v55  ;;  %v829_v21 = vadd.f32 %v821_v10, %v787_v0  ;;  %v845_v0 = vmul.f32 %v837_v32, %v2077_v44 }
 0x33c   :  { %v795_v6 = vrot.slane %v751_v4, 1  ;;  %v771_v18 = vrot.slane %v751_v4, 7 }
 0x33d   :  { %v853_v10 = vadd.f32 %v845_v0, %v2287_v1 }
 0x33e   :  { %v796_v7 = vsel %vm109_vm3, %v790_v59, %v795_v6  ;;  %v772_v26 = vsel %vm96_vm2, %v767_v62, %v771_v18 }
 0x33f   :  { %v815_v9 = vsub.f32 %v796_v7, %v768_v8  ;;  %v839_v22 = vsub.f32 %v768_v8, %v796_v7 }
 0x341   :  { %v823_v43 = vmul.f32 %v815_v9, %v2091_v58  ;;  %v847_v41 = vmul.f32 %v839_v22, %v2089_v57 }
 0x342   :  { %v732_v12 = vpop.permute.xlu0 %731  ;;  %v742_v13 = vpop.permute.xlu1 %741 }
 0x343   :  { %v752_v14 = vsel %vm597_vm7, %v720_v3, %v732_v12  ;;  %v2297_v45 = vsel %vm597_vm7, %v732_v12, %v744_v40  ;;  %v2300_v52 = vsel %vm597_vm7, %v730_v55, %v742_v13  ;;  %v831_v17 = vadd.f32 %v823_v43, %v768_v8 }
 0x344   :  { %v775_v19 = vrot.slane %v752_v14, 7  ;;  %v799_v20 = vrot.slane %v752_v14, 1  ;;  %v886_v23 = vpack.c.bf16 %v2297_v45, %v2300_v52  ;;  %v885_v24 = vpack.c.bf16 %v752_v14, %v751_v4 }
 0x345   :  { %v861_v29 = vpack.c.bf16 %v831_v17, %v829_v21  ;;  %v797_v36 = vrot.slane %v2300_v52, 1  ;;  %v855_v62 = vadd.f32 %v847_v41, %v796_v7  ;;  %v777_v43 = vrot.slane %v2297_v45, 7 }
 0x346   :  { %v2305_v28 = vsel %vm109_vm3, %v799_v20, %v752_v14  ;;  %979 = vmatmul.bf16.gmra.mxu3 %v885_v24  ;;  %1692 = vmatmul.msk.bf16.vlgmr.msrb.gmra.mxu2 %vm599_vm8, %v886_v23  ;;  %v776_v27 = vsel %vm96_vm2, %v771_v18, %v775_v19  ;;  %v2310_v25 = vsel %vm109_vm3, %v795_v6, %v799_v20  ;;  %v801_v12 = vrot.slane %v2297_v45, 1 }
 0x347   :  { %1072 = vmatmul.bf16.vlgmr.msrb.gmra.mxu1 %v861_v29  ;;  %v817_v30 = vsub.f32 %v2310_v25, %v772_v26  ;;  %v819_v31 = vsub.f32 %v2305_v28, %v776_v27  ;;  %v773_v13 = vrot.slane %v2300_v52, 7  ;;  %v1102_v14 = vpack.c.bf16 %v855_v62, %v853_v10 }
 0x348   :  { %v812_v1 = vsel %vm109_vm3, %v801_v12, %v2297_v45  ;;  %v802_v19 = vsel %vm109_vm3, %v797_v36, %v801_v12  ;;  %v841_v52 = vsub.f32 %v772_v26, %v2310_v25  ;;  %v843_v21 = vsub.f32 %v776_v27, %v2305_v28 }
 0x349   :  { %v825_v54 = vmul.f32 %v817_v30, %v2103_v15  ;;  %v827_v59 = vmul.f32 %v819_v31, %v2105_v16 }
 0x34a   :  { %v738_v34 = vpop.permute.xlu0 %737  ;;  %v740_v35 = vpop.permute.xlu1 %739  ;;  %v849_v22 = vmul.f32 %v841_v52, %v2087_v56  ;;  %v851_v30 = vmul.f32 %v843_v21, %v2101_v11 }
 0x34b   :  { %v753_v37 = vsel %vm597_vm7, %v726_v49, %v738_v34  ;;  %v754_v39 = vsel %vm597_vm7, %v728_v42, %v740_v35  ;;  %v833_v6 = vadd.f32 %v825_v54, %v772_v26  ;;  %v835_v8 = vadd.f32 %v827_v59, %v776_v27 }
 0x34c   :  { %v766_v46 = vrot.slane %v753_v37, 7  ;;  %v792_v48 = vrot.slane %v753_v37, 1  ;;  %v769_v50 = vrot.slane %v754_v39, 7  ;;  %v793_v51 = vrot.slane %v754_v39, 1 }
 0x34d   :  { %v884_v53 = vpack.c.bf16 %v754_v39, %v753_v37  ;;  %v863_v17 = vpack.c.bf16 %v835_v8, %v833_v6  ;;  %v857_v26 = vadd.f32 %v849_v22, %v2310_v25  ;;  %v859_v32 = vadd.f32 %v851_v30, %v2305_v28 }
 0x34e   :  { %v788_v60 = vsel %vm96_vm2, %v753_v37, %v766_v46  ;;  %v770_v61 = vsel %vm96_vm2, %v766_v46, %v769_v50  ;;  %v794_v63 = vsel %vm109_vm3, %v792_v48, %v793_v51  ;;  %v798_v49 = vsel %vm109_vm3, %v793_v51, %v797_v36 }
 0x34f   :  { %v814_v42 = vsub.f32 %v794_v63, %v788_v60  ;;  %v816_v55 = vsub.f32 %v798_v49, %v770_v61  ;;  %1691 = vmatmul.msk.bf16.vlgmr.msrb.gmra.mxu0 %vm599_vm8, %v884_v53  ;;  %v838_v4 = vsub.f32 %v788_v60, %v794_v63  ;;  %v840_v5 = vsub.f32 %v770_v61, %v798_v49 }
 0x350   :  { %v774_v18 = vsel %vm96_vm2, %v769_v50, %v773_v13  ;;  %v1104_v37 = vpack.c.bf16 %v859_v32, %v857_v26 }
 0x351   :  { %v822_v2 = vmul.f32 %v814_v42, %v2081_v47  ;;  %v824_v3 = vmul.f32 %v816_v55, %v2091_v58  ;;  %v846_v7 = vmul.f32 %v838_v4, %v2077_v44  ;;  %v848_v47 = vmul.f32 %v840_v5, %v2089_v57 }
 0x352   :  { %v778_v44 = vsel %vm96_vm2, %v773_v13, %v777_v43  ;;  %v818_v23 = vsub.f32 %v802_v19, %v774_v18  ;;  %v842_v35 = vsub.f32 %v774_v18, %v802_v19 }
 0x353   :  { %v832_v9 = vadd.f32 %v824_v3, %v770_v61  ;;  %v830_v40 = vadd.f32 %v822_v2, %v788_v60  ;;  %v854_v20 = vadd.f32 %v846_v7, %v794_v63  ;;  %v856_v57 = vadd.f32 %v848_v47, %v798_v49 }
 0x354   :  { %v820_v24 = vsub.f32 %v812_v1, %v778_v44  ;;  %v826_v45 = vmul.f32 %v818_v23, %v2103_v15  ;;  %v844_v36 = vsub.f32 %v778_v44, %v812_v1  ;;  %v850_v41 = vmul.f32 %v842_v35, %v2087_v56 }
 0x355   :  { %v862_v58 = vpack.c.bf16 %v832_v9, %v830_v40  ;;  %v1103_v29 = vpack.c.bf16 %v856_v57, %v854_v20 }
 0x356   :  { %1193 = vmatmul.bf16.vlgmr.msrb.gmra.mxu3 %v1102_v14  ;;  %v828_v31 = vmul.f32 %v820_v24, %v2105_v16  ;;  %v834_v34 = vadd.f32 %v826_v45, %v774_v18  ;;  %v852_v15 = vmul.f32 %v844_v36, %v2101_v11  ;;  %v858_v46 = vadd.f32 %v850_v41, %v802_v19 }
 0x357   :  { %1729 = vmatmul.msk.bf16.vlgmr.msra.gmra.mxu2 %vm599_vm8, %v862_v58  ;;  %1077 = vmatmul.bf16.gmra.mxu1 %v863_v17 }
 0x358   :  { %v836_v27 = vadd.f32 %v828_v31, %v778_v44  ;;  %v860_v48 = vadd.f32 %v852_v15, %v812_v1 }
 0x35a   :  { %v864_v39 = vpack.c.bf16 %v836_v27, %v834_v34  ;;  %v1105_v16 = vpack.c.bf16 %v860_v48, %v858_v46 }
 0x35f   :  { %1767 = vmatmul.msk.bf16.vlgmr.msra.gmra.mxu0 %vm599_vm8, %v1103_v29 }
 0x366   :  { %1198 = vmatmul.bf16.gmra.mxu3 %v1104_v37 }
 0x367   :  { %1730 = vmatmul.msk.bf16.gmra.mxu2 %vm599_vm8, %v864_v39 }
 0x36f   :  { %1768 = vmatmul.msk.bf16.gmra.mxu0 %vm599_vm8, %v1105_v16 }
 0x3b9   :  { %v975_v25 = vpop.f32.mrf.mxu3 }
 0x3c1   :  { %v977_v28 = vpop.f32.mrf.mxu3 }
 0x3c4   :  { %v1073_v54 = vpop.f32.mrf.mxu1 }
 0x3c9   :  { %v980_v50 = vpop.f32.mrf.mxu3  ;;  %v999_v51 = vpop.f32.mrf.mxu2 }
 0x3ca   :  { %v1000_v6 = vadd.f32 %v999_v51, %v980_v50 }
 0x3cc   :  { %v994_v53 = vpop.f32.mrf.mxu0  ;;  %v1075_v56 = vpop.f32.mrf.mxu1 }
 0x3cd   :  { %v995_v3 = vadd.f32 %v994_v53, %v975_v25 }
 0x3cf   :  { %v1074_v40 = vadd.f32 %v1073_v54, %v995_v3 }
 0x3d1   :  { %v982_v59 = vpop.f32.mrf.mxu3  ;;  %v1001_v60 = vpop.f32.mrf.mxu2 }
 0x3d2   :  { %v1002_v13 = vadd.f32 %v1001_v60, %v982_v59 }
 0x3d4   :  { %v996_v61 = vpop.f32.mrf.mxu0  ;;  %v1078_v0 = vpop.f32.mrf.mxu1 }
 0x3d5   :  { %v997_v2 = vadd.f32 %v996_v61, %v977_v28  ;;  %v1079_v10 = vadd.f32 %v1078_v0, %v1000_v6 }
 0x3d7   :  { %v1076_v8 = vadd.f32 %v1075_v56, %v997_v2 }
 0x3d9   :  { %v1194_v63 = vpop.f32.mrf.mxu3 }
 0x3da   :  { %v1092_v49 = vpop.f32.mrf.mxu2 }
 0x3db   :  { %v1093_v47 = vadd.f32 %v1092_v49, %v1074_v40 }
 0x3dc   :  { %v1213_v42 = vpop.f32.mrf.mxu0  ;;  %v1080_v7 = vpop.f32.mrf.mxu1 }
 0x3dd   :  { %v1214_v14 = vadd.f32 %v1213_v42, %v1194_v63  ;;  %v1081_v18 = vadd.f32 %v1080_v7, %v1002_v13 }
 0x3df   :  { %v2357_v52 = vadd.f32 %v1214_v14, %v1093_v47 }
 0x3e1   :  { %v1196_v55 = vpop.f32.mrf.mxu3  ;;  %v1238_v36 = vmul.f32 %v2357_v52, %v2357_v52 }
 0x3e2   :  { %v1094_v11 = vpop.f32.mrf.mxu2 }
 0x3e3   :  { %v1095_v43 = vadd.f32 %v1094_v11, %v1076_v8 }
 0x3e4   :  { %v1215_v62 = vpop.f32.mrf.mxu0 }
 0x3e5   :  { %v1216_v12 = vadd.f32 %v1215_v62, %v1196_v55 }
 0x3e7   :  { %v2355_v1 = vadd.f32 %v1216_v12, %v1095_v43 }
 0x3e9   :  { %v1199_v4 = vpop.f32.mrf.mxu3  ;;  %v1229_v23 = vadd.f32 %v2355_v1, %v2357_v52  ;;  %v1239_v35 = vmul.f32 %v2355_v1, %v2355_v1 }
 0x3ea   :  { %v1097_v5 = vpop.f32.mrf.mxu2 }
 0x3eb   :  { %v1098_v58 = vadd.f32 %v1097_v5, %v1079_v10  ;;  %v1242_v39 = vadd.f32 %v1239_v35, %v1238_v36 }
 0x3ec   :  { %v1218_v9 = vpop.f32.mrf.mxu0 }
 0x3ed   :  { %v1219_v17 = vadd.f32 %v1218_v9, %v1199_v4 }
 0x3ef   :  { %v2359_v44 = vadd.f32 %v1219_v17, %v1098_v58 }
 0x3f1   :  { %v1201_v57 = vpop.f32.mrf.mxu3  ;;  %v1230_v29 = vadd.f32 %v1229_v23, %v2359_v44  ;;  %v1240_v37 = vmul.f32 %v2359_v44, %v2359_v44 }
 0x3f2   :  { %v1099_v19 = vpop.f32.mrf.mxu2 }
 0x3f3   :  { %v1100_v20 = vadd.f32 %v1099_v19, %v1081_v18  ;;  %v1243_v15 = vadd.f32 %v1242_v39, %v1240_v37 }
 0x3f4   :  { %v1220_v21 = vpop.f32.mrf.mxu0 }
 0x3f5   :  { %v1221_v24 = vadd.f32 %v1220_v21, %v1201_v57 }
 0x3f7   :  { %v2364_v22 = vadd.f32 %v1221_v24, %v1100_v20 }
 0x3f9   :  { %v1231_v30 = vadd.f32 %v1230_v29, %v2364_v22  ;;  %v1241_v41 = vmul.f32 %v2364_v22, %v2364_v22 }
 0x3fb   :  { %v1232_v45 = vrot.slane %v1231_v30, 4  ;;  %v1244_v46 = vadd.f32 %v1243_v15, %v1241_v41 }
 0x3fd   :  { %v1233_v31 = vadd.f32 %v1232_v45, %v1231_v30  ;;  %v1245_v48 = vrot.slane %v1244_v46, 4 }
 0x3ff   :  { %v1234_v26 = vrot.slane %v1233_v31, 2  ;;  %v1246_v16 = vadd.f32 %v1245_v48, %v1244_v46  ;;  %v91_v48 = vld [vmem:[%s2524_s5 + $0x20] sm:$0xf] }
 0x401   :  { %v1235_v32 = vadd.f32 %v1234_v26, %v1233_v31  ;;  %v1247_v25 = vrot.slane %v1246_v16, 2 }
 0x403   :  { %v1236_v34 = vrot.slane %v1235_v32, 1  ;;  %v1248_v28 = vadd.f32 %v1247_v25, %v1246_v16  ;;  %v1545_v25 = vunpack.c.l.b16 %v91_v48 }
 0x405   :  { %v1237_v27 = vadd.f32 %v1236_v34, %v1235_v32  ;;  %v1249_v50 = vrot.slane %v1248_v28, 1 }
 0x407   :  { %1269 = vrot.lane.b32.xlu0 %v1237_v27, %s1949_s0  ;;  %1261 = vrot.lane.b32.xlu1 %v1237_v27, %s1950_s4  ;;  %v1250_v51 = vadd.f32 %v1249_v50, %v1248_v28 }
 0x408   :  { %1252 = vrot.lane.b32.xlu2 %v1237_v27, %s1951_s25 }
 0x40f   :  { %1293 = vrot.lane.b32.xlu0 %v1237_v27, %s1952_s26  ;;  %1285 = vrot.lane.b32.xlu1 %v1237_v27, %s1953_s27 }
 0x410   :  { %1277 = vrot.lane.b32.xlu2 %v1237_v27, %s1954_s28 }
 0x417   :  { %1317 = vrot.lane.b32.xlu0 %v1237_v27, %s1955_s29  ;;  %1309 = vrot.lane.b32.xlu1 %v1237_v27, %s1945_s21 }
 0x418   :  { %1301 = vrot.lane.b32.xlu2 %v1237_v27, %s1956_s30 }
 0x41f   :  { %1341 = vrot.lane.b32.xlu0 %v1237_v27, %s1957_s11  ;;  %1333 = vrot.lane.b32.xlu1 %v1237_v27, %s1958_s12 }
 0x420   :  { %1325 = vrot.lane.b32.xlu2 %v1237_v27, %s1959_s13 }
 0x427   :  { %1257 = vrot.lane.b32.xlu0 %v1250_v51, %s1951_s25  ;;  %1357 = vrot.lane.b32.xlu1 %v1237_v27, %s1960_s14 }
 0x428   :  { %1349 = vrot.lane.b32.xlu2 %v1237_v27, %s1961_s15 }
 0x42f   :  { %1281 = vrot.lane.b32.xlu0 %v1250_v51, %s1954_s28  ;;  %1273 = vrot.lane.b32.xlu1 %v1250_v51, %s1949_s0 }
 0x430   :  { %1265 = vrot.lane.b32.xlu2 %v1250_v51, %s1950_s4 }
 0x437   :  { %1305 = vrot.lane.b32.xlu0 %v1250_v51, %s1956_s30  ;;  %1297 = vrot.lane.b32.xlu1 %v1250_v51, %s1952_s26 }
 0x438   :  { %1289 = vrot.lane.b32.xlu2 %v1250_v51, %s1953_s27 }
 0x43f   :  { %1329 = vrot.lane.b32.xlu0 %v1250_v51, %s1959_s13  ;;  %1321 = vrot.lane.b32.xlu1 %v1250_v51, %s1955_s29 }
 0x440   :  { %1313 = vrot.lane.b32.xlu2 %v1250_v51, %s1945_s21 }
 0x447   :  { %1353 = vrot.lane.b32.xlu0 %v1250_v51, %s1961_s15  ;;  %1345 = vrot.lane.b32.xlu1 %v1250_v51, %s1957_s11 }
 0x448   :  { %1337 = vrot.lane.b32.xlu2 %v1250_v51, %s1958_s12 }
 0x44f   :  { %1365 = vrot.lane.b32.xlu0 %v1237_v27, %s1962_s16  ;;  %1369 = vrot.lane.b32.xlu1 %v1250_v51, %s1962_s16 }
 0x450   :  { %1361 = vrot.lane.b32.xlu2 %v1250_v51, %s1960_s14 }
 0x462   :  { %v1253_v53 = vpop.permute.xlu2 %1252 }
 0x463   :  { %v1255_v2 = vadd.f32 %v1253_v53, %v1237_v27  ;;  %v1550_v53 = vpack.c.b16 %v1545_v25, %v1545_v25 }
 0x46a   :  { %v1278_v54 = vpop.permute.xlu2 %1277 }
 0x472   :  { %v1302_v59 = vpop.permute.xlu2 %1301 }
 0x479   :  { %v1270_v60 = vpop.permute.xlu0 %1269  ;;  %v1262_v61 = vpop.permute.xlu1 %1261 }
 0x47a   :  { %v1326_v49 = vpop.permute.xlu2 %1325  ;;  %v1264_v4 = vadd.f32 %v1262_v61, %v1255_v2  ;;  %v1788_v2 = vld [vmem:[%s2524_s5 + $0x8] sm:$0xff] }
 0x47c   :  { %v1272_v8 = vadd.f32 %v1270_v60, %v1264_v4 }
 0x47e   :  { %v1280_v10 = vadd.f32 %v1278_v54, %v1272_v8 }
 0x481   :  { %v1294_v56 = vpop.permute.xlu0 %1293  ;;  %v1286_v63 = vpop.permute.xlu1 %1285 }
 0x482   :  { %v1350_v11 = vpop.permute.xlu2 %1349  ;;  %v1288_v7 = vadd.f32 %v1286_v63, %v1280_v10  ;;  %v1790_v63 = vld [vmem:[%s2524_s5 + $0x18] sm:$0xff] }
 0x484   :  { %v1296_v58 = vadd.f32 %v1294_v56, %v1288_v7  ;;  %v1556_v56 = vsel %vm241_vm0, %v1550_v53, 0 }
 0x485   :  { %1831 = vmatpush.bf16.msra.mxu3 %v1556_v56  ;;  %1561 = vmatpush.bf16.msra.mxu1 %v1556_v56 }
 0x486   :  { %v1304_v20 = vadd.f32 %v1302_v59, %v1296_v58 }
 0x489   :  { %v1318_v42 = vpop.permute.xlu0 %1317  ;;  %v1310_v55 = vpop.permute.xlu1 %1309  ;;  %1832 = vmatpush.bf16.msra.mxu3 %v1790_v63  ;;  %1562 = vmatpush.bf16.msra.mxu1 %v1790_v63 }
 0x48a   :  { %v1266_v3 = vpop.permute.xlu2 %1265  ;;  %v1312_v23 = vadd.f32 %v1310_v55, %v1304_v20 }
 0x48c   :  { %v1320_v29 = vadd.f32 %v1318_v42, %v1312_v23 }
 0x48e   :  { %v1328_v32 = vadd.f32 %v1326_v49, %v1320_v29 }
 0x491   :  { %v1342_v0 = vpop.permute.xlu0 %1341  ;;  %v1334_v62 = vpop.permute.xlu1 %1333 }
 0x492   :  { %v1290_v40 = vpop.permute.xlu2 %1289  ;;  %v1336_v27 = vadd.f32 %v1334_v62, %v1328_v32 }
 0x494   :  { %v1344_v41 = vadd.f32 %v1342_v0, %v1336_v27 }
 0x496   :  { %v1352_v16 = vadd.f32 %v1350_v11, %v1344_v41  ;;  %v1789_v11 = vld [vmem:[%s2524_s5 + $0x10] sm:$0xff] }
 0x497   :  { %1833 = vmatpush.bf16.msra.mxu3 %v1789_v11  ;;  %1563 = vmatpush.bf16.msra.mxu1 %v1789_v11 }
 0x499   :  { %v1258_v5 = vpop.permute.xlu0 %1257  ;;  %v1358_v6 = vpop.permute.xlu1 %1357 }
 0x49a   :  { %v1260_v9 = vadd.f32 %v1258_v5, %v1250_v51  ;;  %v1314_v21 = vpop.permute.xlu2 %1313  ;;  %v1360_v50 = vadd.f32 %v1358_v6, %v1352_v16 }
 0x49b   :  { %1834 = vmatpush.bf16.msra.mxu3 %v1788_v2  ;;  %1564 = vmatpush.bf16.msra.mxu1 %v1788_v2 }
 0x49c   :  { %v1268_v43 = vadd.f32 %v1266_v3, %v1260_v9  ;;  %v1787_v3 = vld [vmem:[%s2524_s5] sm:$0xff] }
 0x49f   :  { %1835 = vmatpush.bf16.msra.mxu3 %v1787_v3  ;;  %1565 = vmatpush.bf16.msra.mxu1 %v1787_v3 }
 0x4a1   :  { %v1282_v12 = vpop.permute.xlu0 %1281  ;;  %v1274_v13 = vpop.permute.xlu1 %1273 }
 0x4a2   :  { %v1276_v47 = vadd.f32 %v1274_v13, %v1268_v43  ;;  %v1338_v35 = vpop.permute.xlu2 %1337  ;;  %1786 = vmatmul.msk.bf16.vlgmr.msra.gmra.mxu3 %vm234_vm1, %v2073_v38  ;;  %1785 = vmatmul.msk.bf16.vlgmr.msra.gmra.mxu1 %vm234_vm1, %v2063_v33 }
 0x4a4   :  { %v1284_v14 = vadd.f32 %v1282_v12, %v1276_v47 }
 0x4a6   :  { %v1292_v17 = vadd.f32 %v1290_v40, %v1284_v14 }
 0x4a9   :  { %v1306_v18 = vpop.permute.xlu0 %1305  ;;  %v1298_v19 = vpop.permute.xlu1 %1297 }
 0x4aa   :  { %v1300_v57 = vadd.f32 %v1298_v19, %v1292_v17  ;;  %v1362_v28 = vpop.permute.xlu2 %1361 }
 0x4ac   :  { %v1308_v24 = vadd.f32 %v1306_v18, %v1300_v57 }
 0x4ae   :  { %v1316_v30 = vadd.f32 %v1314_v21, %v1308_v24 }
 0x4b1   :  { %v1330_v45 = vpop.permute.xlu0 %1329  ;;  %v1322_v31 = vpop.permute.xlu1 %1321 }
 0x4b2   :  { %v1324_v26 = vadd.f32 %v1322_v31, %v1316_v30 }
 0x4b4   :  { %v1332_v34 = vadd.f32 %v1330_v45, %v1324_v26 }
 0x4b6   :  { %v1340_v36 = vadd.f32 %v1338_v35, %v1332_v34 }
 0x4b9   :  { %v1354_v37 = vpop.permute.xlu0 %1353  ;;  %v1346_v39 = vpop.permute.xlu1 %1345 }
 0x4ba   :  { %v1348_v15 = vadd.f32 %v1346_v39, %v1340_v36 }
 0x4bc   :  { %v1356_v46 = vadd.f32 %v1354_v37, %v1348_v15 }
 0x4be   :  { %v1364_v51 = vadd.f32 %v1362_v28, %v1356_v46 }
 0x4c1   :  { %v1366_v54 = vpop.permute.xlu0 %1365  ;;  %v1370_v59 = vpop.permute.xlu1 %1369 }
 0x4c2   :  { %v1368_v60 = vadd.f32 %v1366_v54, %v1360_v50  ;;  %v1372_v61 = vadd.f32 %v1370_v59, %v1364_v51 }
 0x4c4   :  { %v2412_v49 = vmul.f32 0.001953125, %v1368_v60  ;;  %v1374_v42 = vmul.f32 0.001953125, %v1372_v61 }
 0x4c6   :  { %v1375_v55 = vmul.f32 %v2412_v49, %v2412_v49  ;;  %1395 = vrot.lane.b32.xlu1 %v2412_v49, %s1961_s15  ;;  %1392 = vrot.lane.b32.xlu0 %v2412_v49, %s1960_s14 }
 0x4c7   :  { %1389 = vrot.lane.b32.xlu2 %v2412_v49, %s1962_s16 }
 0x4c8   :  { %v1376_v0 = vsub.f32 %v1374_v42, %v1375_v55 }
 0x4ca   :  { %v1377_v62 = vadd.f32 1e-05, %v1376_v0 }
 0x4cc   :  { %1864 = vrsqrt.f32 %v1377_v62  ;;  %vm1384_vm2 = vweird.f32 %v1377_v62 }
 0x4ce   :  { %1404 = vrot.lane.b32.xlu1 %v2412_v49, %s1959_s13  ;;  %1401 = vrot.lane.b32.xlu0 %v2412_v49, %s1958_s12 }
 0x4cf   :  { %1398 = vrot.lane.b32.xlu2 %v2412_v49, %s1957_s11 }
 0x4d2   :  { %v1865_v4 = vpop.eup %1864 }
 0x4d3   :  { %v1379_v5 = vmul.f32 %v1865_v4, %v1377_v62  ;;  %vm1385_vm0 = vweird.f32 %v1865_v4 }
 0x4d4   :  { %vm1386_vm3 = vmor %vm1384_vm2, %vm1385_vm0 }
 0x4d5   :  { %v1380_v6 = vmul.f32 %v1865_v4, %v1379_v5 }
 0x4d6   :  { %1413 = vrot.lane.b32.xlu1 %v2412_v49, %s1956_s30  ;;  %1410 = vrot.lane.b32.xlu0 %v2412_v49, %s1945_s21 }
 0x4d7   :  { %1407 = vrot.lane.b32.xlu2 %v2412_v49, %s1955_s29  ;;  %v1381_v8 = vmul.f32 0.5, %v1380_v6 }
 0x4d9   :  { %v1382_v9 = vsub.f32 1.5, %v1381_v8  ;;  %v1227_v8 = vld [vmem:[%s2527_s8] sm:$0x1] }
 0x4db   :  { %v1383_v10 = vmul.f32 %v1865_v4, %v1382_v9 }
 0x4dd   :  { %v1387_v40 = vsel %vm1386_vm3, %v1865_v4, %v1383_v10 }
 0x4de   :  { %1419 = vrot.lane.b32.xlu1 %v2412_v49, %s1953_s27  ;;  %1422 = vrot.lane.b32.xlu0 %v2412_v49, %s1954_s28 }
 0x4df   :  { %1416 = vrot.lane.b32.xlu2 %v2412_v49, %s1952_s26 }
 0x4e6   :  { %1428 = vrot.lane.b32.xlu1 %v2412_v49, %s1950_s4  ;;  %1453 = vrot.lane.b32.xlu0 %v1387_v40, %s1960_s14 }
 0x4e7   :  { %1425 = vrot.lane.b32.xlu2 %v2412_v49, %s1949_s0 }
 0x4ee   :  { %1456 = vrot.lane.b32.xlu1 %v1387_v40, %s1961_s15  ;;  %1462 = vrot.lane.b32.xlu0 %v1387_v40, %s1958_s12 }
 0x4ef   :  { %1450 = vrot.lane.b32.xlu2 %v1387_v40, %s1962_s16 }
 0x4f6   :  { %1465 = vrot.lane.b32.xlu1 %v1387_v40, %s1959_s13  ;;  %1471 = vrot.lane.b32.xlu0 %v1387_v40, %s1945_s21 }
 0x4f7   :  { %1459 = vrot.lane.b32.xlu2 %v1387_v40, %s1957_s11 }
 0x4fe   :  { %1474 = vrot.lane.b32.xlu1 %v1387_v40, %s1956_s30  ;;  %1477 = vrot.lane.b32.xlu0 %v1387_v40, %s1952_s26  ;;  %s1587_s26 = sshll.u32 %s2529_s10, 4  ;;  %s1588_s26 = int_to_ptr.hbm [resolvable:$true] %s1587_s26 }
 0x4ff   :  { %1468 = vrot.lane.b32.xlu2 %v1387_v40, %s1955_s29 }
 0x506   :  { %1483 = vrot.lane.b32.xlu1 %v1387_v40, %s1954_s28  ;;  %1486 = vrot.lane.b32.xlu0 %v1387_v40, %s1949_s0  ;;  %s1964_s28 = smov 128  }
 0x507   :  { %1480 = vrot.lane.b32.xlu2 %v1387_v40, %s1953_s27 }
 0x50e   :  { %1492 = vrot.lane.b32.xlu1 %v1387_v40, %s1951_s25  ;;  %1431 = vrot.lane.b32.xlu0 %v2412_v49, %s1951_s25 }
 0x50f   :  { %1489 = vrot.lane.b32.xlu2 %v1387_v40, %s1950_s4 }
 0x51f   :  { %v1567_v3 = vpop.f32.mrf.mxu1 }
 0x521   :  { %v1390_v33 = vpop.permute.xlu2 %1389 }
 0x522   :  { %v1434_v45 = vsel %vm597_vm7, %v2412_v49, %v1390_v33 }
 0x525   :  { %v1572_v6 = vpop.f32.mrf.mxu3 }
 0x529   :  { %v1399_v38 = vpop.permute.xlu2 %1398 }
 0x531   :  { %v1408_v13 = vpop.permute.xlu2 %1407 }
 0x538   :  { %v1396_v43 = vpop.permute.xlu1 %1395  ;;  %v1393_v12 = vpop.permute.xlu0 %1392 }
 0x539   :  { %v1417_v14 = vpop.permute.xlu2 %1416  ;;  %v1435_v26 = vsel %vm599_vm8, %v1434_v45, %v1393_v12 }
 0x53a   :  { %v1436_v35 = vsel %vm601_vm9, %v1435_v26, %v1396_v43 }
 0x53b   :  { %v1437_v39 = vsel %vm603_vm10, %v1436_v35, %v1399_v38 }
 0x540   :  { %v1405_v7 = vpop.permute.xlu1 %1404  ;;  %v1402_v47 = vpop.permute.xlu0 %1401 }
 0x541   :  { %v1426_v18 = vpop.permute.xlu2 %1425  ;;  %v1438_v41 = vsel %vm605_vm11, %v1437_v39, %v1402_v47 }
 0x542   :  { %v1439_v16 = vsel %vm607_vm12, %v1438_v41, %v1405_v7 }
 0x548   :  { %v1414_v58 = vpop.permute.xlu1 %1413  ;;  %v1411_v17 = vpop.permute.xlu0 %1410 }
 0x549   :  { %v1451_v57 = vpop.permute.xlu2 %1450 }
 0x54a   :  { %v1495_v31 = vsel %vm597_vm7, %v1387_v40, %v1451_v57  ;;  %vm2532_vm7 = vcmask 457728  }
 0x550   :  { %v1420_v19 = vpop.permute.xlu1 %1419  ;;  %v1423_v20 = vpop.permute.xlu0 %1422 }
 0x551   :  { %v1460_v30 = vpop.permute.xlu2 %1459 }
 0x558   :  { %v1429_v21 = vpop.permute.xlu1 %1428  ;;  %v1454_v23 = vpop.permute.xlu0 %1453 }
 0x559   :  { %v1496_v32 = vsel %vm599_vm8, %v1495_v31, %v1454_v23  ;;  %v1469_v15 = vpop.permute.xlu2 %1468  ;;  %vm2533_vm8 = vmmov %vm2532_vm7  ;;  %v1574_v31 = vpop.f32.mrf.mxu3 }
 0x55a   :  { %v1440_v51 = vsel %vm2533_vm8, %v1439_v16, %v1408_v13 }
 0x560   :  { %v1457_v24 = vpop.permute.xlu1 %1456  ;;  %v1463_v29 = vpop.permute.xlu0 %1462 }
 0x561   :  { %v1497_v34 = vsel %vm601_vm9, %v1496_v32, %v1457_v24  ;;  %vm2534_vm9 = vcmask 523264   ;;  %v1481_v61 = vpop.permute.xlu2 %1480 }
 0x562   :  { %v1498_v27 = vsel %vm603_vm10, %v1497_v34, %v1460_v30  ;;  %v1441_v53 = vsel %vm2534_vm9, %v1440_v51, %v1411_v17  ;;  %vm2535_vm0 = vmmov %vm2534_vm9  ;;  %v1861_v17 = vld [vmem:[%s2528_s9] ss:$0 sm:$0xff]  ;;  %v1569_v30 = vpop.f32.mrf.mxu1  ;;  %s1963_s9 = smov [#allocation7]  }
 0x563   :  { %v1499_v46 = vsel %vm605_vm11, %v1498_v27, %v1463_v29  ;;  %v1442_v60 = vsel %vm234_vm1, %v1441_v53, %v1414_v58  ;;  %s1585_s27 = sshll.u32 %s1963_s9, 4  ;;  %s1586_s27 = int_to_ptr.vmem [resolvable:$true] %s1585_s27 }
 0x564   :  { %v1443_v63 = vsel %vm614_vm15, %v1442_v60, %v1417_v14 }
 0x565   :  { %v1444_v55 = vsel %vm616_vm4, %v1443_v63, %v1420_v19 }
 0x566   :  { %v1445_v62 = vsel %vm618_vm5, %v1444_v55, %v1423_v20 }
 0x567   :  { %v1446_v4 = vsel %vm620_vm6, %v1445_v62, %v1426_v18 }
 0x568   :  { %v1466_v36 = vpop.permute.xlu1 %1465  ;;  %v1472_v37 = vpop.permute.xlu0 %1471  ;;  %v1447_v9 = vsel %vm622_vm14, %v1446_v4, %v1429_v21 }
 0x569   :  { %v1500_v48 = vsel %vm607_vm12, %v1499_v46, %v1466_v36  ;;  %v1490_v5 = vpop.permute.xlu2 %1489 }
 0x56a   :  { %v1501_v25 = vsel %vm2532_vm7, %v1500_v48, %v1469_v15 }
 0x56b   :  { %v1502_v54 = vsel %vm2535_vm0, %v1501_v25, %v1472_v37 }
 0x570   :  { %v1475_v28 = vpop.permute.xlu1 %1474  ;;  %v1478_v50 = vpop.permute.xlu0 %1477 }
 0x571   :  { %v1503_v59 = vsel %vm234_vm1, %v1502_v54, %v1475_v28 }
 0x572   :  { %v1504_v56 = vsel %vm614_vm15, %v1503_v59, %v1478_v50 }
 0x573   :  { %v1505_v11 = vsel %vm616_vm4, %v1504_v56, %v1481_v61 }
 0x578   :  { %v1484_v49 = vpop.permute.xlu1 %1483  ;;  %v1487_v42 = vpop.permute.xlu0 %1486 }
 0x579   :  { %v1506_v0 = vsel %vm618_vm5, %v1505_v11, %v1484_v49 }
 0x57a   :  { %v1507_v2 = vsel %vm620_vm6, %v1506_v0, %v1487_v42 }
 0x57b   :  { %v1508_v40 = vsel %vm622_vm14, %v1507_v2, %v1490_v5 }
 0x580   :  { %v1493_v10 = vpop.permute.xlu1 %1492  ;;  %v1432_v33 = vpop.permute.xlu0 %1431 }
 0x581   :  { %v1509_v38 = vsel %vm624_vm13, %v1508_v40, %v1493_v10  ;;  %v1448_v43 = vsel %vm624_vm13, %v1447_v9, %v1432_v33 }
 0x582   :  { %v1515_v12 = vmul.f32 %v1509_v38, %v1227_v8  ;;  %v1510_v13 = vperm.slane %v1448_v43, 0 }
 0x584   :  { %v1516_v7 = vperm.slane %v1515_v12, 0  ;;  %v1511_v47 = vsub.f32 %v2357_v52, %v1510_v13  ;;  %v1513_v14 = vsub.f32 %v2359_v44, %v1510_v13  ;;  %v1512_v58 = vsub.f32 %v2355_v1, %v1510_v13 }
 0x585   :  { %v1514_v18 = vsub.f32 %v2364_v22, %v1510_v13 }
 0x586   :  { %v1517_v19 = vmul.f32 %v1516_v7, %v1511_v47  ;;  %v1519_v20 = vmul.f32 %v1516_v7, %v1513_v14  ;;  %v1518_v57 = vmul.f32 %v1516_v7, %v1512_v58 }
 0x587   :  { %v1520_v21 = vmul.f32 %v1516_v7, %v1514_v18 }
 0x588   :  { %v1524_v23 = vadd.f32 %v1861_v17, %v1517_v19  ;;  %v1525_v24 = vadd.f32 %v1861_v17, %v1518_v57  ;;  %v1526_v29 = vadd.f32 %v1861_v17, %v1519_v20 }
 0x589   :  { %v1527_v45 = vadd.f32 %v1861_v17, %v1520_v21 }
 0x58a   :  { %v1568_v1 = vadd.f32 %v1567_v3, %v1524_v23  ;;  %v1570_v52 = vadd.f32 %v1569_v30, %v1525_v24  ;;  %v1573_v44 = vadd.f32 %v1572_v6, %v1526_v29 }
 0x58b   :  { %v1575_v22 = vadd.f32 %v1574_v31, %v1527_v45 }
 0x58c   :  { %1578 = vst [vmem:[#allocation7 + $0x8] sm:$0xff] %v1570_v52 }
 0x58d   :  { %1577 = vst [vmem:[#allocation7] sm:$0xff] %v1568_v1 }
 0x58e   :  { %1579 = vst [vmem:[#allocation7 + $0x10] sm:$0xff] %v1573_v44 }
 0x58f   :  { %1580 = vst [vmem:[#allocation7 + $0x18] sm:$0xff] %v1575_v22 }
 0x590   :  { %1593 = dma.vmem_to_hbm [thread:$0]  %s1586_s27, 512, %s1588_s26, [#allocation4], %s1964_s28, %s1964_s28, %s1962_s16  }
 0x591   :  { %1942 = dma.done.wait [#allocation4], 512  }
 0x592   :  { %1943 = vsyncadd [#allocation4], 4294966784 }
 0x593   :  { %1598 = vsyncpa [#allocation3], 1 }
 0x594   :  { %1599 = vsyncpa [#allocation6], 1 }
 0x595   :  { %1600 = vsyncpa [#allocation4], 1 }

</bundles_post_ra>
